<compile_context>
chip_gen: v7x
topology: tpu7x:2x2x1
jax: 0.10.0
libtpu: 0.0.40
codegen_flags: <defaults>
</compile_context>

<pallas_src>
import jax
import jax.numpy as jnp
from jax.experimental import pallas as pl
from jax.experimental.pallas import tpu as pltpu


# ----------------------------------------------------------------------------
# Fused kernel: conv3x3(pad=1) + bias + ReLU + global-avg-pool + fc1 + ReLU + fc2
# Grid = (B, n_row_tiles).  Each step consumes one halo'd row-band of one image
# (flattened [ (TILE_H+2)*(W+2), C ], bf16) and accumulates the pooled sum of
# ReLU'd conv activations into a [1, Cout] VMEM scratch; the tiny head runs in
# the last-tile epilogue.
# ----------------------------------------------------------------------------
def make_fused_kernel(H, W, TILE_H, COUT):
    Wp = W + 2                      # padded row width
    S = TILE_H * Wp                 # "wide" output rows per tile (incl. 2 pad cols)
    inv_hw = 1.0 / float(H * W)

    def kernel(x_ref, w9_ref, cb_ref, w1_ref, b1_ref, w2_ref, b2_ref,
               o_ref, acc_ref):
        t = pl.program_id(1)

        @pl.when(t == 0)
        def _init():
            acc_ref[...] = jnp.zeros_like(acc_ref)

        # Load the bf16 tile once, upcast so the 9 shifted-window slices are
        # plain 32-bit relayouts; re-cast to bf16 right before the MXU.
        xs = x_ref[0, 0, :, :].astype(jnp.float32)          # [flat_pad, C]

        conv = jnp.zeros((S, COUT), jnp.float32)
        for ky in range(3):
            for kx in range(3):
                start = ky * Wp + kx                          # static offset
                sl = xs[start:start + S, :].astype(jnp.bfloat16)   # [S, C]
                conv = conv + jnp.dot(sl, w9_ref[ky * 3 + kx],
                                      preferred_element_type=jnp.float32)

        conv = jnp.maximum(conv + cb_ref[...], 0.0)           # bias + ReLU (f32)

        # Mask the 2 horizontal-pad columns carried in the "wide" layout so
        # they don't pollute the pooled sum (ReLU comes before the mean, so we
        # must sum ReLU'd activations of valid pixels only).
        col = jax.lax.broadcasted_iota(jnp.int32, (S, COUT), 0) % Wp
        conv = jnp.where(col < W, conv, 0.0)

        acc_ref[...] += jnp.sum(conv, axis=0, keepdims=True)  # [1, COUT]

        @pl.when(t == pl.num_programs(1) - 1)
        def _finish():
            pooled = acc_ref[...] * inv_hw                    # global avg pool
            f10 = jnp.dot(pooled, w1_ref[...],
                          preferred_element_type=jnp.float32) + b1_ref[...]
            f10 = jnp.maximum(f10, 0.0)                       # module_head ReLU
            logits = jnp.dot(f10, w2_ref[...],
                             preferred_element_type=jnp.float32) + b2_ref[...]
            o_ref[0] = logits.astype(o_ref.dtype)

    return kernel


# ----------------------------------------------------------------------------
# Wrapper: layout prep (pad + halo'd row-band tiles, bf16) and the pallas_call
# ----------------------------------------------------------------------------
def head_cnns_forward(x, params):
    """Forward of HeadCNNs(is_reengineering=True): original_model(x) then head."""
    B, C, H, W = x.shape
    COUT = params["conv_w"].shape[0]
    NF = params["fc1_w"].shape[0]           # 10
    NC = params["head_w"].shape[0]          # num_classes

    TILE_H = 8 if H % 8 == 0 else H         # row-band height (divides H)
    T = H // TILE_H
    Wp = W + 2
    flat = (TILE_H + 2) * Wp                # halo'd band, flattened (rows*cols)
    flat_pad = ((flat + 2 + 7) // 8) * 8    # +2 slack for the largest shift, 8-aligned

    # NCHW -> NHWC, zero-pad spatially by 1 (the conv's padding=1)
    xn = jnp.transpose(x, (0, 2, 3, 1))                     # [B, H, W, C]
    xp = jnp.pad(xn, ((0, 0), (1, 1), (1, 1), (0, 0)))      # [B, H+2, W+2, C]

    # Halo-duplicated row bands (2 extra rows per band, NOT a 9x im2col).
    bands = [xp[:, t * TILE_H: t * TILE_H + TILE_H + 2].reshape(B, flat, C)
             for t in range(T)]
    xt = jnp.stack(bands, axis=1)                           # [B, T, flat, C]
    xt = jnp.pad(xt, ((0, 0), (0, 0), (0, flat_pad - flat), (0, 0)))
    xt = xt.astype(jnp.bfloat16)                            # halve HBM traffic

    # Conv weight [Cout, C, 3, 3] -> [9, C, Cout]  (tap-major), bf16 for the MXU.
    w9 = jnp.transpose(params["conv_w"], (2, 3, 1, 0)).reshape(9, C, COUT)
    w9 = w9.astype(jnp.bfloat16)
    cb = params["conv_b"].reshape(1, COUT).astype(jnp.float32)
    w1 = params["fc1_w"].T.astype(jnp.float32)              # [COUT, 10]
    b1 = params["fc1_b"].reshape(1, NF).astype(jnp.float32)
    w2 = params["head_w"].T.astype(jnp.float32)             # [10, NC]
    b2 = params["head_b"].reshape(1, NC).astype(jnp.float32)

    kernel = make_fused_kernel(H, W, TILE_H, COUT)

    out = pl.pallas_call(
        kernel,
        out_shape=jax.ShapeDtypeStruct((B, 1, NC), jnp.float32),
        grid_spec=pltpu.PrefetchScalarGridSpec(
            num_scalar_prefetch=0,
            grid=(B, T),
            in_specs=[
                pl.BlockSpec((1, 1, flat_pad, C), lambda b, t: (b, t, 0, 0)),
                pl.BlockSpec((9, C, COUT), lambda b, t: (0, 0, 0)),
                pl.BlockSpec((1, COUT), lambda b, t: (0, 0)),
                pl.BlockSpec((COUT, NF), lambda b, t: (0, 0)),
                pl.BlockSpec((1, NF), lambda b, t: (0, 0)),
                pl.BlockSpec((NF, NC), lambda b, t: (0, 0)),
                pl.BlockSpec((1, NC), lambda b, t: (0, 0)),
            ],
            out_specs=pl.BlockSpec((1, 1, NC), lambda b, t: (b, 0, 0)),
            scratch_shapes=[pltpu.VMEM((1, COUT), jnp.float32)],
        ),
        compiler_params=pltpu.CompilerParams(
            dimension_semantics=("parallel", "arbitrary")),
    )(xt, w9, cb, w1, b1, w2, b2)

    return out[:, 0, :]                                     # [B, num_classes]


# ----------------------------------------------------------------------------
# Parameters + pure-JAX reference (for a sanity check against the kernel)
# ----------------------------------------------------------------------------
def init_params(key, c_in=4, c_mid=8, num_ftrs=10, num_classes=2):
    k1, k2, k3, k4, k5, k6 = jax.random.split(key, 6)
    return {
        # stand-in original_model params
        "conv_w": jax.random.normal(k1, (c_mid, c_in, 3, 3), jnp.float32) * 0.1,
        "conv_b": jax.random.normal(k2, (c_mid,), jnp.float32) * 0.1,
        "fc1_w": jax.random.normal(k3, (num_ftrs, c_mid), jnp.float32) * 0.1,
        "fc1_b": jax.random.normal(k4, (num_ftrs,), jnp.float32) * 0.1,
        # module_head Linear(num_ftrs -> num_classes)
        "head_w": jax.random.normal(k5, (num_classes, num_ftrs), jnp.float32) * 0.1,
        "head_b": jax.random.normal(k6, (num_classes,), jnp.float32) * 0.1,
    }


def reference_forward(x, params):
    # Match the kernel's bf16 rounding of conv inputs/weights (f32 accumulate).
    xb = x.astype(jnp.bfloat16).astype(jnp.float32)
    wb = params["conv_w"].astype(jnp.bfloat16).astype(jnp.float32)
    conv = jax.lax.conv_general_dilated(
        xb, wb, window_strides=(1, 1), padding=((1, 1), (1, 1)),
        dimension_numbers=("NCHW", "OIHW", "NCHW"))
    conv = jnp.maximum(conv + params["conv_b"].reshape(1, -1, 1, 1), 0.0)
    pooled = conv.mean(axis=(2, 3))
    f10 = pooled @ params["fc1_w"].T + params["fc1_b"]
    f10 = jnp.maximum(f10, 0.0)                              # module_head ReLU
    return f10 @ params["head_w"].T + params["head_b"]


if __name__ == "__main__":
    key = jax.random.PRNGKey(0)
    kx_, kp = jax.random.split(key)

    B, C, H, W = 2, 4, 16, 16
    x = jax.random.normal(kx_, (B, C, H, W), jnp.float32)
    params = init_params(kp, c_in=C)

    out = head_cnns_forward(x, params)
    jax.block_until_ready(out)

    assert out.shape == (B, 2) and out.dtype == jnp.float32
    ref = reference_forward(x, params)
    assert jnp.allclose(out, ref, rtol=1e-2, atol=1e-2)
    print("KERNEL_OK")
</pallas_src>

<mosaic_0001>
module attributes {stable_mosaic.version = 11 : i64} {
  func.func @kernel(%arg0: i32, %arg1: i32, %arg2: memref<1x1x184x4xbf16, #tpu.memory_space<vmem>>, %arg3: memref<9x4x8xbf16, #tpu.memory_space<vmem>>, %arg4: memref<1x8xf32, #tpu.memory_space<vmem>>, %arg5: memref<8x10xf32, #tpu.memory_space<vmem>>, %arg6: memref<1x10xf32, #tpu.memory_space<vmem>>, %arg7: memref<10x2xf32, #tpu.memory_space<vmem>>, %arg8: memref<1x2xf32, #tpu.memory_space<vmem>>, %arg9: memref<1x1x2xf32, #tpu.memory_space<vmem>>, %arg10: memref<1x8xf32, #tpu.memory_space<vmem>>) attributes {dimension_semantics = [#tpu.dimension_semantics<parallel>, #tpu.dimension_semantics<arbitrary>], iteration_bounds = array<i64: 2, 2>, scalar_prefetch = 0 : i64, scratch_operands = 1 : i64, tpu.core_type = #tpu.core_type<tc>, window_params = [{transform_indices = @transform_0, window_bounds = array<i64: 1, 1, 184, 4>}, {pipeline_mode = #tpu.pipeline_mode<synchronous>, transform_indices = @transform_1, window_bounds = array<i64: 9, 4, 8>}, {pipeline_mode = #tpu.pipeline_mode<synchronous>, transform_indices = @transform_2, window_bounds = array<i64: 1, 8>}, {pipeline_mode = #tpu.pipeline_mode<synchronous>, transform_indices = @transform_3, window_bounds = array<i64: 8, 10>}, {pipeline_mode = #tpu.pipeline_mode<synchronous>, transform_indices = @transform_4, window_bounds = array<i64: 1, 10>}, {pipeline_mode = #tpu.pipeline_mode<synchronous>, transform_indices = @transform_5, window_bounds = array<i64: 10, 2>}, {pipeline_mode = #tpu.pipeline_mode<synchronous>, transform_indices = @transform_6, window_bounds = array<i64: 1, 2>}, {transform_indices = @transform_7, window_bounds = array<i64: 1, 1, 2>}]} {
    %c0_i32 = arith.constant 0 : i32
    %0 = arith.cmpi eq, %arg1, %c0_i32 : i32
    %1 = arith.extui %0 : i1 to i32
    %c0_i32_0 = arith.constant 0 : i32
    %2 = arith.cmpi ne, %1, %c0_i32_0 : i32
    scf.if %2 {
      %cst_47 = arith.constant 0.000000e+00 : f32
      %95 = vector.broadcast %cst_47 : f32 to vector<1x8xf32>
      %c0_48 = arith.constant 0 : index
      %c0_49 = arith.constant 0 : index
      %96 = vector.load %arg10[%c0_48, %c0_49] : memref<1x8xf32, #tpu.memory_space<vmem>>, vector<1x8xf32>
      tpu.vector_store %arg10[%c0_48, %c0_49], %95 {strides = array<i32>} : memref<1x8xf32, #tpu.memory_space<vmem>>, vector<1x8xf32>,
    } else {
    }
    %c0 = arith.constant 0 : index
    %c0_1 = arith.constant 0 : index
    %c0_2 = arith.constant 0 : index
    %c0_3 = arith.constant 0 : index
    %3 = vector.load %arg2[%c0, %c0_1, %c0_2, %c0_3] : memref<1x1x184x4xbf16, #tpu.memory_space<vmem>>, vector<1x1x184x4xbf16>
    %4 = vector.shape_cast %3 : vector<1x1x184x4xbf16> to vector<184x4xbf16>
    %5 = arith.extf %4 : vector<184x4xbf16> to vector<184x4xf32>
    %cst = arith.constant 0.000000e+00 : f32
    %6 = vector.broadcast %cst : f32 to vector<144x8xf32>
    %7 = vector.extract_strided_slice %5 {offsets = [0, 0], sizes = [144, 4], strides = [1, 1]} : vector<184x4xf32> to vector<144x4xf32>
    %8 = arith.truncf %7 : vector<144x4xf32> to vector<144x4xbf16>
    %c0_4 = arith.constant 0 : index
    %c0_5 = arith.constant 0 : index
    %c0_6 = arith.constant 0 : index
    %9 = vector.load %arg3[%c0_4, %c0_5, %c0_6] : memref<9x4x8xbf16, #tpu.memory_space<vmem>>, vector<1x4x8xbf16>
    %10 = vector.shape_cast %9 : vector<1x4x8xbf16> to vector<4x8xbf16>
    %cst_7 = arith.constant dense<0.000000e+00> : vector<144x8xf32>
    %11 = tpu.matmul %8, %10, %cst_7 {dimension_numbers = #tpu.dot_dimension_numbers<[1], [0], [0], [1], [0, 0, 1, 1], [], []>} : vector<144x4xbf16>, vector<4x8xbf16>, vector<144x8xf32> -> vector<144x8xf32>
    %12 = arith.addf %6, %11 : vector<144x8xf32>
    %13 = vector.extract_strided_slice %5 {offsets = [1, 0], sizes = [144, 4], strides = [1, 1]} : vector<184x4xf32> to vector<144x4xf32>
    %14 = arith.truncf %13 : vector<144x4xf32> to vector<144x4xbf16>
    %c1 = arith.constant 1 : index
    %c0_8 = arith.constant 0 : index
    %c0_9 = arith.constant 0 : index
    %15 = vector.load %arg3[%c1, %c0_8, %c0_9] : memref<9x4x8xbf16, #tpu.memory_space<vmem>>, vector<1x4x8xbf16>
    %16 = vector.shape_cast %15 : vector<1x4x8xbf16> to vector<4x8xbf16>
    %cst_10 = arith.constant dense<0.000000e+00> : vector<144x8xf32>
    %17 = tpu.matmul %14, %16, %cst_10 {dimension_numbers = #tpu.dot_dimension_numbers<[1], [0], [0], [1], [0, 0, 1, 1], [], []>} : vector<144x4xbf16>, vector<4x8xbf16>, vector<144x8xf32> -> vector<144x8xf32>
    %18 = arith.addf %12, %17 : vector<144x8xf32>
    %19 = vector.extract_strided_slice %5 {offsets = [2, 0], sizes = [144, 4], strides = [1, 1]} : vector<184x4xf32> to vector<144x4xf32>
    %20 = arith.truncf %19 : vector<144x4xf32> to vector<144x4xbf16>
    %c2 = arith.constant 2 : index
    %c0_11 = arith.constant 0 : index
    %c0_12 = arith.constant 0 : index
    %21 = vector.load %arg3[%c2, %c0_11, %c0_12] : memref<9x4x8xbf16, #tpu.memory_space<vmem>>, vector<1x4x8xbf16>
    %22 = vector.shape_cast %21 : vector<1x4x8xbf16> to vector<4x8xbf16>
    %cst_13 = arith.constant dense<0.000000e+00> : vector<144x8xf32>
    %23 = tpu.matmul %20, %22, %cst_13 {dimension_numbers = #tpu.dot_dimension_numbers<[1], [0], [0], [1], [0, 0, 1, 1], [], []>} : vector<144x4xbf16>, vector<4x8xbf16>, vector<144x8xf32> -> vector<144x8xf32>
    %24 = arith.addf %18, %23 : vector<144x8xf32>
    %25 = vector.extract_strided_slice %5 {offsets = [18, 0], sizes = [144, 4], strides = [1, 1]} : vector<184x4xf32> to vector<144x4xf32>
    %26 = arith.truncf %25 : vector<144x4xf32> to vector<144x4xbf16>
    %c3 = arith.constant 3 : index
    %c0_14 = arith.constant 0 : index
    %c0_15 = arith.constant 0 : index
    %27 = vector.load %arg3[%c3, %c0_14, %c0_15] : memref<9x4x8xbf16, #tpu.memory_space<vmem>>, vector<1x4x8xbf16>
    %28 = vector.shape_cast %27 : vector<1x4x8xbf16> to vector<4x8xbf16>
    %cst_16 = arith.constant dense<0.000000e+00> : vector<144x8xf32>
    %29 = tpu.matmul %26, %28, %cst_16 {dimension_numbers = #tpu.dot_dimension_numbers<[1], [0], [0], [1], [0, 0, 1, 1], [], []>} : vector<144x4xbf16>, vector<4x8xbf16>, vector<144x8xf32> -> vector<144x8xf32>
    %30 = arith.addf %24, %29 : vector<144x8xf32>
    %31 = vector.extract_strided_slice %5 {offsets = [19, 0], sizes = [144, 4], strides = [1, 1]} : vector<184x4xf32> to vector<144x4xf32>
    %32 = arith.truncf %31 : vector<144x4xf32> to vector<144x4xbf16>
    %c4 = arith.constant 4 : index
    %c0_17 = arith.constant 0 : index
    %c0_18 = arith.constant 0 : index
    %33 = vector.load %arg3[%c4, %c0_17, %c0_18] : memref<9x4x8xbf16, #tpu.memory_space<vmem>>, vector<1x4x8xbf16>
    %34 = vector.shape_cast %33 : vector<1x4x8xbf16> to vector<4x8xbf16>
    %cst_19 = arith.constant dense<0.000000e+00> : vector<144x8xf32>
    %35 = tpu.matmul %32, %34, %cst_19 {dimension_numbers = #tpu.dot_dimension_numbers<[1], [0], [0], [1], [0, 0, 1, 1], [], []>} : vector<144x4xbf16>, vector<4x8xbf16>, vector<144x8xf32> -> vector<144x8xf32>
    %36 = arith.addf %30, %35 : vector<144x8xf32>
    %37 = vector.extract_strided_slice %5 {offsets = [20, 0], sizes = [144, 4], strides = [1, 1]} : vector<184x4xf32> to vector<144x4xf32>
    %38 = arith.truncf %37 : vector<144x4xf32> to vector<144x4xbf16>
    %c5 = arith.constant 5 : index
    %c0_20 = arith.constant 0 : index
    %c0_21 = arith.constant 0 : index
    %39 = vector.load %arg3[%c5, %c0_20, %c0_21] : memref<9x4x8xbf16, #tpu.memory_space<vmem>>, vector<1x4x8xbf16>
    %40 = vector.shape_cast %39 : vector<1x4x8xbf16> to vector<4x8xbf16>
    %cst_22 = arith.constant dense<0.000000e+00> : vector<144x8xf32>
    %41 = tpu.matmul %38, %40, %cst_22 {dimension_numbers = #tpu.dot_dimension_numbers<[1], [0], [0], [1], [0, 0, 1, 1], [], []>} : vector<144x4xbf16>, vector<4x8xbf16>, vector<144x8xf32> -> vector<144x8xf32>
    %42 = arith.addf %36, %41 : vector<144x8xf32>
    %43 = vector.extract_strided_slice %5 {offsets = [36, 0], sizes = [144, 4], strides = [1, 1]} : vector<184x4xf32> to vector<144x4xf32>
    %44 = arith.truncf %43 : vector<144x4xf32> to vector<144x4xbf16>
    %c6 = arith.constant 6 : index
    %c0_23 = arith.constant 0 : index
    %c0_24 = arith.constant 0 : index
    %45 = vector.load %arg3[%c6, %c0_23, %c0_24] : memref<9x4x8xbf16, #tpu.memory_space<vmem>>, vector<1x4x8xbf16>
    %46 = vector.shape_cast %45 : vector<1x4x8xbf16> to vector<4x8xbf16>
    %cst_25 = arith.constant dense<0.000000e+00> : vector<144x8xf32>
    %47 = tpu.matmul %44, %46, %cst_25 {dimension_numbers = #tpu.dot_dimension_numbers<[1], [0], [0], [1], [0, 0, 1, 1], [], []>} : vector<144x4xbf16>, vector<4x8xbf16>, vector<144x8xf32> -> vector<144x8xf32>
    %48 = arith.addf %42, %47 : vector<144x8xf32>
    %49 = vector.extract_strided_slice %5 {offsets = [37, 0], sizes = [144, 4], strides = [1, 1]} : vector<184x4xf32> to vector<144x4xf32>
    %50 = arith.truncf %49 : vector<144x4xf32> to vector<144x4xbf16>
    %c7 = arith.constant 7 : index
    %c0_26 = arith.constant 0 : index
    %c0_27 = arith.constant 0 : index
    %51 = vector.load %arg3[%c7, %c0_26, %c0_27] : memref<9x4x8xbf16, #tpu.memory_space<vmem>>, vector<1x4x8xbf16>
    %52 = vector.shape_cast %51 : vector<1x4x8xbf16> to vector<4x8xbf16>
    %cst_28 = arith.constant dense<0.000000e+00> : vector<144x8xf32>
    %53 = tpu.matmul %50, %52, %cst_28 {dimension_numbers = #tpu.dot_dimension_numbers<[1], [0], [0], [1], [0, 0, 1, 1], [], []>} : vector<144x4xbf16>, vector<4x8xbf16>, vector<144x8xf32> -> vector<144x8xf32>
    %54 = arith.addf %48, %53 : vector<144x8xf32>
    %55 = vector.extract_strided_slice %5 {offsets = [38, 0], sizes = [144, 4], strides = [1, 1]} : vector<184x4xf32> to vector<144x4xf32>
    %56 = arith.truncf %55 : vector<144x4xf32> to vector<144x4xbf16>
    %c8 = arith.constant 8 : index
    %c0_29 = arith.constant 0 : index
    %c0_30 = arith.constant 0 : index
    %57 = vector.load %arg3[%c8, %c0_29, %c0_30] : memref<9x4x8xbf16, #tpu.memory_space<vmem>>, vector<1x4x8xbf16>
    %58 = vector.shape_cast %57 : vector<1x4x8xbf16> to vector<4x8xbf16>
    %cst_31 = arith.constant dense<0.000000e+00> : vector<144x8xf32>
    %59 = tpu.matmul %56, %58, %cst_31 {dimension_numbers = #tpu.dot_dimension_numbers<[1], [0], [0], [1], [0, 0, 1, 1], [], []>} : vector<144x4xbf16>, vector<4x8xbf16>, vector<144x8xf32> -> vector<144x8xf32>
    %60 = arith.addf %54, %59 : vector<144x8xf32>
    %c0_32 = arith.constant 0 : index
    %c0_33 = arith.constant 0 : index
    %61 = vector.load %arg4[%c0_32, %c0_33] : memref<1x8xf32, #tpu.memory_space<vmem>>, vector<1x8xf32>
    %62 = vector.broadcast %61 : vector<1x8xf32> to vector<144x8xf32>
    %63 = arith.addf %60, %62 : vector<144x8xf32>
    %cst_34 = arith.constant 0.000000e+00 : f32
    %64 = vector.broadcast %cst_34 : f32 to vector<144x8xf32>
    %65 = arith.maximumf %63, %64 : vector<144x8xf32>
    %66 = tpu.iota {dimensions = array<i32: 0>} : vector<144x8xi32>
    %c18_i32 = arith.constant 18 : i32
    %c0_i32_35 = arith.constant 0 : i32
    %67 = arith.cmpi eq, %c18_i32, %c0_i32_35 : i32
    %c1_i32 = arith.constant 1 : i32
    %68 = arith.select %67, %c1_i32, %c18_i32 : i32
    %69 = vector.broadcast %68 : i32 to vector<144x8xi32>
    %70 = arith.remsi %66, %69 : vector<144x8xi32>
    %c0_i32_36 = arith.constant 0 : i32
    %71 = vector.broadcast %c0_i32_36 : i32 to vector<144x8xi32>
    %72 = arith.cmpi ne, %70, %71 : vector<144x8xi32>
    %c0_i32_37 = arith.constant 0 : i32
    %73 = vector.broadcast %c0_i32_37 : i32 to vector<144x8xi32>
    %74 = arith.cmpi slt, %70, %73 : vector<144x8xi32>
    %c0_i32_38 = arith.constant 0 : i32
    %75 = arith.cmpi slt, %68, %c0_i32_38 : i32
    %76 = vector.broadcast %75 : i1 to vector<144x8xi1>
    %77 = vector.broadcast %76 : vector<144x8xi1> to vector<144x8xi1>
    %78 = arith.xori %74, %77 : vector<144x8xi1>
    %79 = arith.andi %78, %72 : vector<144x8xi1>
    %80 = vector.broadcast %68 : i32 to vector<144x8xi32>
    %81 = arith.addi %70, %80 : vector<144x8xi32>
    %82 = arith.select %79, %81, %70 : vector<144x8xi1>, vector<144x8xi32>
    %c16_i32 = arith.constant 16 : i32
    %83 = vector.broadcast %c16_i32 : i32 to vector<144x8xi32>
    %84 = arith.cmpi slt, %82, %83 : vector<144x8xi32>
    %cst_39 = arith.constant 0.000000e+00 : f32
    %85 = vector.broadcast %cst_39 : f32 to vector<144x8xf32>
    %86 = arith.select %84, %65, %85 : vector<144x8xi1>, vector<144x8xf32>
    %c0_40 = arith.constant 0 : index
    %c0_41 = arith.constant 0 : index
    %87 = vector.load %arg10[%c0_40, %c0_41] : memref<1x8xf32, #tpu.memory_space<vmem>>, vector<1x8xf32>
    %cst_42 = arith.constant dense<0.000000e+00> : vector<8xf32>
    %88 = vector.multi_reduction <add>, %86, %cst_42 [0] : vector<144x8xf32> to vector<8xf32>
    %89 = vector.shape_cast %88 : vector<8xf32> to vector<1x8xf32>
    %90 = arith.addf %87, %89 : vector<1x8xf32>
    %c0_43 = arith.constant 0 : index
    %c0_44 = arith.constant 0 : index
    %91 = vector.load %arg10[%c0_43, %c0_44] : memref<1x8xf32, #tpu.memory_space<vmem>>, vector<1x8xf32>
    tpu.vector_store %arg10[%c0_43, %c0_44], %90 {strides = array<i32>} : memref<1x8xf32, #tpu.memory_space<vmem>>, vector<1x8xf32>,
    %c1_i32_45 = arith.constant 1 : i32
    %92 = arith.cmpi eq, %arg1, %c1_i32_45 : i32
    %93 = arith.extui %92 : i1 to i32
    %c0_i32_46 = arith.constant 0 : i32
    %94 = arith.cmpi ne, %93, %c0_i32_46 : i32
    scf.if %94 {
      %c0_47 = arith.constant 0 : index
      %c0_48 = arith.constant 0 : index
      %95 = vector.load %arg10[%c0_47, %c0_48] : memref<1x8xf32, #tpu.memory_space<vmem>>, vector<1x8xf32>
      %cst_49 = arith.constant 3.906250e-03 : f32
      %96 = vector.broadcast %cst_49 : f32 to vector<1x8xf32>
      %97 = arith.mulf %95, %96 : vector<1x8xf32>
      %c0_50 = arith.constant 0 : index
      %c0_51 = arith.constant 0 : index
      %98 = vector.load %arg5[%c0_50, %c0_51] : memref<8x10xf32, #tpu.memory_space<vmem>>, vector<8x10xf32>
      %cst_52 = arith.constant dense<0.000000e+00> : vector<1x10xf32>
      %99 = tpu.matmul %97, %98, %cst_52 {dimension_numbers = #tpu.dot_dimension_numbers<[1], [0], [0], [1], [0, 0, 1, 1], [], []>} : vector<1x8xf32>, vector<8x10xf32>, vector<1x10xf32> -> vector<1x10xf32>
      %c0_53 = arith.constant 0 : index
      %c0_54 = arith.constant 0 : index
      %100 = vector.load %arg6[%c0_53, %c0_54] : memref<1x10xf32, #tpu.memory_space<vmem>>, vector<1x10xf32>
      %101 = arith.addf %99, %100 : vector<1x10xf32>
      %cst_55 = arith.constant 0.000000e+00 : f32
      %102 = vector.broadcast %cst_55 : f32 to vector<1x10xf32>
      %103 = arith.maximumf %101, %102 : vector<1x10xf32>
      %c0_56 = arith.constant 0 : index
      %c0_57 = arith.constant 0 : index
      %104 = vector.load %arg7[%c0_56, %c0_57] : memref<10x2xf32, #tpu.memory_space<vmem>>, vector<10x2xf32>
      %cst_58 = arith.constant dense<0.000000e+00> : vector<1x2xf32>
      %105 = tpu.matmul %103, %104, %cst_58 {dimension_numbers = #tpu.dot_dimension_numbers<[1], [0], [0], [1], [0, 0, 1, 1], [], []>} : vector<1x10xf32>, vector<10x2xf32>, vector<1x2xf32> -> vector<1x2xf32>
      %c0_59 = arith.constant 0 : index
      %c0_60 = arith.constant 0 : index
      %106 = vector.load %arg8[%c0_59, %c0_60] : memref<1x2xf32, #tpu.memory_space<vmem>>, vector<1x2xf32>
      %107 = arith.addf %105, %106 : vector<1x2xf32>
      %c0_61 = arith.constant 0 : index
      %c0_62 = arith.constant 0 : index
      %c0_63 = arith.constant 0 : index
      %108 = vector.load %arg9[%c0_61, %c0_62, %c0_63] : memref<1x1x2xf32, #tpu.memory_space<vmem>>, vector<1x1x2xf32>
      %109 = vector.shape_cast %108 : vector<1x1x2xf32> to vector<1x2xf32>
      %110 = vector.shape_cast %107 : vector<1x2xf32> to vector<1x1x2xf32>
      tpu.vector_store %arg9[%c0_61, %c0_62, %c0_63], %110 {strides = array<i32>} : memref<1x1x2xf32, #tpu.memory_space<vmem>>, vector<1x1x2xf32>,
    } else {
    }
    return
  }
  func.func @transform_0(%arg0: i32, %arg1: i32) -> (i32, i32, i32, i32) {
    %c0_i32 = arith.constant 0 : i32
    %c0_i32_0 = arith.constant 0 : i32
    %c0_i32_1 = arith.constant 0 : i32
    return %arg0, %arg1, %c0_i32, %c0_i32_0 : i32, i32, i32, i32
  }
  func.func @transform_1(%arg0: i32, %arg1: i32) -> (i32, i32, i32) {
    %c0_i32 = arith.constant 0 : i32
    %c0_i32_0 = arith.constant 0 : i32
    %c0_i32_1 = arith.constant 0 : i32
    %c0_i32_2 = arith.constant 0 : i32
    return %c0_i32, %c0_i32_0, %c0_i32_1 : i32, i32, i32
  }
  func.func @transform_2(%arg0: i32, %arg1: i32) -> (i32, i32) {
    %c0_i32 = arith.constant 0 : i32
    %c0_i32_0 = arith.constant 0 : i32
    %c0_i32_1 = arith.constant 0 : i32
    return %c0_i32, %c0_i32_0 : i32, i32
  }
  func.func @transform_3(%arg0: i32, %arg1: i32) -> (i32, i32) {
    %c0_i32 = arith.constant 0 : i32
    %c0_i32_0 = arith.constant 0 : i32
    %c0_i32_1 = arith.constant 0 : i32
    return %c0_i32, %c0_i32_0 : i32, i32
  }
  func.func @transform_4(%arg0: i32, %arg1: i32) -> (i32, i32) {
    %c0_i32 = arith.constant 0 : i32
    %c0_i32_0 = arith.constant 0 : i32
    %c0_i32_1 = arith.constant 0 : i32
    return %c0_i32, %c0_i32_0 : i32, i32
  }
  func.func @transform_5(%arg0: i32, %arg1: i32) -> (i32, i32) {
    %c0_i32 = arith.constant 0 : i32
    %c0_i32_0 = arith.constant 0 : i32
    %c0_i32_1 = arith.constant 0 : i32
    return %c0_i32, %c0_i32_0 : i32, i32
  }
  func.func @transform_6(%arg0: i32, %arg1: i32) -> (i32, i32) {
    %c0_i32 = arith.constant 0 : i32
    %c0_i32_0 = arith.constant 0 : i32
    %c0_i32_1 = arith.constant 0 : i32
    return %c0_i32, %c0_i32_0 : i32, i32
  }
  func.func @transform_7(%arg0: i32, %arg1: i32) -> (i32, i32, i32) {
    %c0_i32 = arith.constant 0 : i32
    %c0_i32_0 = arith.constant 0 : i32
    %c0_i32_1 = arith.constant 0 : i32
    return %arg0, %c0_i32, %c0_i32_0 : i32, i32, i32
  }
}

</mosaic_0001>

<bundles_post_ra>
// kernel: tpu_custom_call.1
= control target key start
LH: loop header
LB: loop body
LE: loop exit
PB: predicated region body
PF: predicated region fallthrough
CT: control target
= control target key end

     0   :  { %12 = vsyncpa [#allocation4], 0  ;;  %s4925_s0 = inlined_call_operand.vmem [shape: bf16[2,2,184,4], index: 0, kind: input, shape index: {}]   ;;  %s4926_s1 = inlined_call_operand.vmem [shape: bf16[9,4,8], index: 1, kind: input, shape index: {}]   ;;  %s4927_s2 = inlined_call_operand.vmem [shape: f32[1,8], index: 2, kind: input, shape index: {}]   ;;  %s4928_s3 = inlined_call_operand.vmem [shape: f32[8,10], index: 3, kind: input, shape index: {}]   ;;  %s4929_s4 = inlined_call_operand.vmem [shape: f32[1,10], index: 4, kind: input, shape index: {}]   ;;  %s4930_s5 = inlined_call_operand.vmem [shape: f32[10,2], index: 5, kind: input, shape index: {}]   ;;  %s4931_s6 = inlined_call_operand.vmem [shape: f32[1,2], index: 6, kind: input, shape index: {}]   ;;  %s4932_s7 = inlined_call_operand.hbm [shape: f32[2,1,2], index: 7, kind: output, shape index: {}]  }
   0x1   :  { %14 = vsyncpa [#allocation4 + $0x1], 0  ;;  %s3468_s24 = smov 0   ;;  %s3470_s25 = smov 0  }
   0x2   :  { %s3472_s26 = smov 0   ;;  %s3474_s27 = smov 0  }
   0x3   :  { %s3476_s28 = smov 0   ;;  %s3478_s29 = smov 0  }
   0x4   :  { %s3480_s30 = smov 0   ;;  %s3482_s8 = smov 0  }
   0x5 LB: > { %s2621_s9 = sadd.s32 4294967295, %s3418_s8   ;;  %s2622_s10 = sadd.s32 4294967294, %s3418_s8   ;;  %s3418_s8 = sphi %s3482_s8, %s20_s8   ;;  %s3414_s30 = sphi %s3480_s30, %s5002_s30   ;;  %s3410_s29 = sphi %s3478_s29, %s5001_s29   ;;  %s3406_s28 = sphi %s3476_s28, %s5000_s28   ;;  %s3402_s27 = sphi %s3474_s27, %s4999_s27   ;;  %s3398_s26 = sphi %s3472_s26, %s4998_s26   ;;  %s3394_s25 = sphi %s3470_s25, %s4997_s25   ;;  %s3390_s24 = sphi %s3468_s24, %s4996_s24  }
   0x6   : > { %s29_s11 = sadd.s32 1, %s3410_s29  ;;  %s32_s12 = sadd.s32 1, %s3414_s30 }
   0x7   : > { %p30_p0 = scmp.ge.s32.totalorder %s29_s11, 2  ;;  %p203_p1 = scmp.ne.s32.totalorder %s3398_s26, %s3394_s25 }
   0x8   : > { %p204_p2 = scmp.eq.s32.totalorder %s2621_s9, 3  ;;  %p209_p4 = scmp.ne.s32.totalorder %s3394_s25, %s3390_s24 }
   0x9   : > { %s5004_s11 = smov (%p30_p0, %s29_s11), 0  ;;  %s5006_s12 = smov (!%p30_p0, %s32_s12), %s3414_s30 }
   0xa   : > { %4934 = sst [smem:[#allocation6_spill]] %s5004_s11  ;;  %p3517_p3 = por %p204_p2, %p203_p1 }
   0xb   : > { %p34_p5 = scmp.ge.s32.totalorder %s5006_s12, 2  ;;  %p210_p6 = scmp.eq.s32.totalorder %s2622_s10, 3 }
   0xc   : > { %p2625_p7 = scmp.ge.s32.totalorder %s3418_s8, 1  ;;  %p258_p8 = scmp.lt.s32.totalorder %s3418_s8, 5 }
   0xd   : > { %s5008_s12 = smov (%p34_p5, %s5006_s12), 0  ;;  %p3527_p9 = por %p210_p6, %p209_p4 }
   0xe   : > { %4936 = sst [smem:[#allocation7_spill]] %s5008_s12  ;;  %p259_p10 = pnand %p2625_p7, %p258_p8 }
   0xf   : > { %s190_s15 = ssub.s32 %s3414_s30, %s5008_s12  ;;  %s193_s16 = sadd.s32 1, %s3398_s26 }
  0x10   : > { %p191_p11 = scmp.eq.s32.totalorder %s190_s15, 0  ;;  %262 = sbr.rel (%p259_p10) target bundleno = 1066 (0x42a), region = 48 }
  0x11   : > { %s291_s18 = sand.u32 (!%p259_p10), 1, %s3394_s25   ;;  %p293_p12 = scmp.lt.s32.totalorder (!%p259_p10), %s3406_s28, 1 }
  0x12   : > { %s3535_s17 = scalar_select %p191_p11, %s3398_s26, %s193_s16  }
  0x13   : > { %p295_p13 = scmp.lt.s32.totalorder (!%p259_p10), %s3402_s27, 1  ;;  %s3549_s12 = scalar_lea.vmem (!%p259_p10), [#allocation3], %s291_s18 }
  0x14   : > { %p2627_p0 = scmp.ne.s32.totalorder (!%p259_p10), %s3402_s27, 0 }
  0x17   : > { %s294_s19 = scalar_select %p293_p12, %s3406_s28, 1 }
  0x18   : > { %s296_s20 = scalar_select %p295_p13, %s3402_s27, 1 }
  0x19   : > { %s3195_s21 = smul.u32 46, %s294_s19  ;;  %vm307_vm0 = vcmask (!%p2627_p0), 57344   ;;  %v3420_v0 = vmov (!%p2627_p0), 0.0  }
  0x1a   : > { %s3194_s22 = smul.u32 23, %s296_s20  ;;  %308 = vst.msk [vmem:[#allocation2] sm:$0x1] (!%p2627_p0), %vm307_vm0, %v3420_v0 }
  0x1b   : > { %306 = sbr.rel (%p2627_p0) target bundleno = 34 (0x22), region = 52 }
  0x1c   : > { %s299_s23 = sadd.s32 %s3195_s21, %s3194_s22 }
  0x1d   : > { %s2626_s9 = sshll.u32 %s299_s23, 2 }
  0x1e   : > { %s3545_s16 = scalar_lea.vmem %s4925_s0, %s2626_s9 }
  0x22 PF: > { %v2638_v1 = vld [vmem:[%s4926_s1 + $0x2] sm:$0x3]  ;;  %vm473_vm1 = vcmask 1041408   ;;  %v3421_v3 = vmov 0.0   ;;  %v3562_v5 = vld [vmem:[%s3545_s16 + $0x8] sm:$0xff]   ;;  %vm3422_vm3 = vmmov 0  }
  0x23   : > { %v3556_v2 = vld [vmem:[%s3545_s16] sm:$0xff]   ;;  %2834 = vmatprep.subr.bf16.mxu0 %v3421_v3  ;;  %3192 = vmatprep.subr.bf16.mxu1 %v3421_v3  ;;  %v475_v4 = vsel %vm473_vm1, %v2638_v1, 0  ;;  %vm368_vm2 = vsmask.f32 7424  ;;  %v377_v8 = vshll.u32 %v3562_v5, 16  ;;  %v3574_v11 = vld [vmem:[%s3545_s16 + $0x28] sm:$0xff]  }
  0x24   : > { %2835 = vmatpush3.bf16.msra.mxu0 %v475_v4  ;;  %3193 = vmatpush3.bf16.msra.mxu1 %v475_v4  ;;  %v370_v6 = vshrl.u32 %v3556_v2, 16  ;;  %v372_v7 = vshll.u32 %v3556_v2, 16  ;;  %v3577_v12 = vld [vmem:[%s3545_s16 + $0x30] sm:$0xff]   ;;  %vm445_vm4 = vcmask 31744   ;;  %v2657_v14 = vld [vmem:[%s4926_s1 + $0x4] sm:$0x3] }
  0x25   : > { %2836 = vmatprep.mubr.msk.bf16.mxu0 %vm3422_vm3, %v3421_v3  ;;  %2856 = vmatprep.mubr.msk.bf16.mxu1 %vm3422_vm3, %v3421_v3  ;;  %v379_v10 = vrot.slane %v377_v8, 1  ;;  %v3580_v13 = vld [vmem:[%s3545_s16 + $0x10] sm:$0xff]   ;;  %v3586_v16 = vshll.u32 %v3574_v11, 16  ;;  %v3589_v17 = vshrl.u32 %v3574_v11, 16  ;;  %v3592_v18 = vshll.u32 %v3577_v12, 16  ;;  %v3595_v19 = vld [vmem:[%s3545_s16 + $0x38] sm:$0xff]  }
  0x26   : > { %2910 = vmatprep.subr.bf16.mxu0 %v3421_v3  ;;  %2872 = vmatprep.subr.bf16.mxu1 %v3421_v3  ;;  %v374_v9 = vrot.slane %v372_v7, 1  ;;  %v768_v20 = vsel %vm473_vm1, %v2657_v14, 0  ;;  %v381_v21 = vshrl.u32 %v3562_v5, 16  ;;  %v3600_v22 = vshll.u32 %v3580_v13, 16  ;;  %v364_v26 = vld [vmem:[%s4926_s1] sm:$0x3] }
  0x27   : > { %v411_v24 = vrot.slane %v3586_v16, 1  ;;  %v419_v25 = vrot.slane %v3592_v18, 1  ;;  %v3610_v27 = vshrl.u32 %v3577_v12, 16  ;;  %v3613_v28 = vld [vmem:[%s3545_s16 + $0x18] sm:$0xff]   ;;  %v3622_v32 = vshll.u32 %v3595_v19, 16  ;;  %v3630_v36 = vld [vmem:[%s3545_s16 + $0x40] sm:$0xff]  }
  0x28   : > { %v375_v15 = vor.u32 %v374_v9, %v370_v6  ;;  %v383_v30 = vor.u32 %v381_v21, %v379_v10  ;;  %v387_v31 = vrot.slane %v3600_v22, 1  ;;  %v601_v33 = vsel %vm473_vm1, %v364_v26, 0  ;;  %v327_v43 = vld [vmem:[%s3545_s16 + $0x48] sm:$0xf]  ;;  %v3657_v47 = vld [vmem:[%s3545_s16 + $0x20] sm:$0xff]   ;;  %p2732_p1 = scmp.ne.s32.totalorder %s3402_s27, 1 }
  0x29   : > { %v415_v29 = vor.u32 %v3589_v17, %v411_v24  ;;  %v423_v35 = vor.u32 %v3610_v27, %v419_v25  ;;  %v427_v38 = vrot.slane %v3622_v32, 1  ;;  %v3637_v39 = vshrl.u32 %v3580_v13, 16 }
  0x2a   : > { %v380_v23 = vsel %vm368_vm2, %v375_v15, %v379_v10  ;;  %v388_v37 = vsel %vm368_vm2, %v383_v30, %v387_v31  ;;  %v3640_v40 = vshll.u32 %v3613_v28, 16  ;;  %v3645_v41 = vshrl.u32 %v3595_v19, 16 }
  0x2b   : > { %2837 = vmatmul.mubr.msk.bf16.vlgmr.msra.gmra.mrb[0].mxu0 %vm445_vm4, %v380_v23  ;;  %v420_v34 = vsel %vm368_vm2, %v415_v29, %v419_v25  ;;  %v3648_v42 = vshll.u32 %v3630_v36, 16  ;;  %v428_v44 = vsel %vm368_vm2, %v423_v35, %v427_v38  ;;  %v391_v45 = vor.u32 %v3637_v39, %v387_v31  ;;  %v2679_v29 = vld [vmem:[%s4926_s1 + $0x8] sm:$0x3] }
  0x2c   : > { %2911 = vmatpush3.bf16.msra.mxu0 %v768_v20  ;;  %2840 = vmatprep.mubr.msk.bf16.mxu0 %vm3422_vm3, %v3421_v3  ;;  %v395_v46 = vrot.slane %v3640_v40, 1  ;;  %v3659_v48 = vrot.slane %v377_v8, 2  ;;  %v3661_v49 = vrot.slane %v381_v21, 1  ;;  %v2637_v50 = vcombine.low %v327_v43, %v327_v43  ;;  %v328_v8 = vld [vmem:[%s3545_s16 + $0x4c] sm:$0xf] }
  0x2d   : > { %2986 = vmatprep.subr.bf16.mxu0 %v3421_v3  ;;  %2857 = vmatmul.mubr.msk.bf16.vlgmr.msra.gmra.mrb[0].mxu1 %vm445_vm4, %v420_v34  ;;  %v431_v51 = vor.u32 %v3645_v41, %v427_v38  ;;  %v435_v52 = vrot.slane %v3648_v42, 1  ;;  %v3667_v53 = vshrl.u32 %v3613_v28, 16  ;;  %v3673_v55 = vshll.u32 %v3657_v47, 16  ;;  %v2669_v21 = vld [vmem:[%s4926_s1 + $0x6] sm:$0x3] }
  0x2e   : > { %2873 = vmatpush3.bf16.msra.mxu1 %v601_v33  ;;  %2860 = vmatprep.mubr.msk.bf16.mxu1 %vm3422_vm3, %v3421_v3  ;;  %v396_v54 = vsel %vm368_vm2, %v391_v45, %v395_v46  ;;  %v3676_v56 = vrot.slane %v3630_v36, 1  ;;  %v738_v57 = vrot.slane %v2637_v50, 1  ;;  %vm720_vm5 = vcmask 1046528  }
  0x2f   : > { %2948 = vmatprep.subr.bf16.mxu1 %v3421_v3  ;;  %v1040_v58 = vor.u32 %v3659_v48, %v3661_v49  ;;  %v399_v60 = vor.u32 %v3667_v53, %v395_v46  ;;  %v436_v61 = vsel %vm368_vm2, %v431_v51, %v435_v52  ;;  %v403_v62 = vrot.slane %v3673_v55, 1 }
  0x30   : > { %v3682_v59 = vsel %vm720_vm5, %v3676_v56, %v738_v57  ;;  %v3691_v63 = vshrl.u32 %v3630_v36, 16  ;;  %v441_v0 = vshll.u32 %v2637_v50, 16  ;;  %v3699_v7 = vshrl.u32 %v3657_v47, 16 }
  0x31   : > { %v404_v1 = vsel %vm368_vm2, %v399_v60, %v403_v62  ;;  %v3704_v10 = vcombine.low %v327_v43, %v328_v8  ;;  %v721_v25 = vrot.slane %v3556_v2, 1  ;;  %v910_v26 = vsel %vm473_vm1, %v2669_v21, 0 }
  0x32   : > { %v439_v4 = vor.u32 %v3691_v63, %v435_v52  ;;  %v443_v6 = vrot.slane %v441_v0, 1  ;;  %v407_v14 = vor.u32 %v3699_v7, %v403_v62  ;;  %v1115_v31 = vsel %vm473_vm1, %v2679_v29, 0  ;;  %v2701_v62 = vld [vmem:[%s4926_s1 + $0xc] sm:$0x3] }
  0x33   : > { %2841 = vmatmul.mubr.msk.bf16.gmra.mrb[4].mxu0 %vm445_vm4, %v388_v37  ;;  %v899_v20 = vrot.slane %v3704_v10, 1  ;;  %v724_v33 = vrot.slane %v3580_v13, 1  ;;  %v726_v34 = vrot.slane %v3613_v28, 1  ;;  %v728_v37 = vrot.slane %v3657_v47, 1 }
  0x34   : > { %2844 = vmatprep.mubr.msk.bf16.mxu0 %vm3422_vm3, %v3421_v3  ;;  %v444_v9 = vsel %vm368_vm2, %v439_v4, %v443_v6  ;;  %v412_v15 = vsel %vm368_vm2, %v407_v14, %v411_v24  ;;  %v722_v24 = vrot.slane %v3562_v5, 1  ;;  %v730_v43 = vrot.slane %v3574_v11, 1 }
  0x35   : > { %2861 = vmatmul.mubr.msk.bf16.gmra.mrb[4].mxu1 %vm445_vm4, %v428_v44  ;;  %v3723_v23 = vsel %vm720_vm5, %v3676_v56, %v899_v20  ;;  %v727_v35 = vsel %vm720_vm5, %v724_v33, %v726_v34  ;;  %v729_v38 = vsel %vm720_vm5, %v726_v34, %v728_v37  ;;  %v732_v45 = vrot.slane %v3577_v12, 1 }
  0x36   : > { %2864 = vmatprep.mubr.msk.bf16.mxu1 %vm3422_vm3, %v3421_v3  ;;  %v723_v30 = vsel %vm720_vm5, %v721_v25, %v722_v24  ;;  %v731_v44 = vsel %vm720_vm5, %v728_v37, %v730_v43  ;;  %v734_v50 = vrot.slane %v3595_v19, 1  ;;  %v1042_v57 = vrot.slane %v3600_v22, 2 }
  0x37   : > { %v733_v46 = vsel %vm720_vm5, %v730_v43, %v732_v45  ;;  %vm1037_vm6 = vsmask.f32 6400  ;;  %v1045_v0 = vrot.slane %v3667_v53, 1  ;;  %v1432_v4 = vsel %vm473_vm1, %v2701_v62, 0 }
  0x38   : > { %v3796_v51 = vsel %vm720_vm5, %v732_v45, %v734_v50  ;;  %v3808_v52 = vsel %vm720_vm5, %v734_v50, %v3676_v56  ;;  %v2689_v56 = vld [vmem:[%s4926_s1 + $0xa] sm:$0x3]  ;;  %v1049_v49 = vrot.slane %v3699_v7, 1  ;;  %v1053_v14 = vrot.slane %v3589_v17, 1  ;;  %v3897_v45 = vld [vmem:[%s3545_s16 + $0x50] sm:$0xf] }
  0x39   : > { %v1066_v37 = vrot.slane %v3648_v42, 2  ;;  %v1070_v43 = vshrl.u32 %v3704_v10, 16  ;;  %vm1242_vm7 = vcmask 1045504   ;;  %vm1559_vm8 = vsmask.f32 5376 }
  0x3a   : > { %vm1764_vm9 = vcmask 1044480  }
  0x3b   : > { %2845 = vmatmul.mubr.msk.bf16.gmra.mrb[8].mxu0 %vm445_vm4, %v396_v54  ;;  %v1041_v54 = vrot.slane %v3637_v39, 1  ;;  %v1072_v50 = vrot.slane %v1070_v43, 1 }
  0x3c   : > { %2848 = vmatprep.mubr.msk.bf16.mxu0 %vm3422_vm3, %v3421_v3 }
  0x3d   : > { %2865 = vmatmul.mubr.msk.bf16.gmra.mrb[8].mxu1 %vm445_vm4, %v436_v61  ;;  %v1043_v60 = vor.u32 %v1042_v57, %v1041_v54  ;;  %v1290_v61 = vsel %vm473_vm1, %v2689_v56, 0  ;;  %v3908_v54 = vcombine.low %v3897_v45, %v3897_v45 }
  0x3e   : > { %2868 = vmatprep.mubr.msk.bf16.mxu1 %vm3422_vm3, %v3421_v3 }
  0x3f   : > { %v1079_v57 = vshrl.u32 %v3908_v54, 16  ;;  %v1082_v56 = vshll.u32 %v3908_v54, 16 }
  0x41   : > { %v1081_v62 = vrot.slane %v1079_v57, 1 }
  0x43   : > { %2849 = vmatmul.mubr.msk.bf16.gmra.mrb[12].mxu0 %vm445_vm4, %v404_v1  ;;  %v1046_v1 = vrot.slane %v3640_v40, 2 }
  0x44   : > { %2852 = vmatprep.mubr.msk.bf16.mxu0 %vm3422_vm3, %v3421_v3 }
  0x45   : > { %2869 = vmatmul.mubr.msk.bf16.gmra.mrb[12].mxu1 %vm445_vm4, %v444_v9  ;;  %v1047_v6 = vor.u32 %v1046_v1, %v1045_v0 }
  0x46   : > { %2874 = vmatprep.mubr.msk.bf16.mxu1 %vm3422_vm3, %v3421_v3 }
  0x47   : > { %v1048_v48 = vsel %vm1037_vm6, %v1043_v60, %v1047_v6 }
  0x4b   : > { %2853 = vmatmul.mubr.msk.bf16.gmra.mrb[16].mxu0 %vm445_vm4, %v412_v15  ;;  %v1054_v15 = vrot.slane %v3586_v16, 2 }
  0x4c   : > { %2912 = vmatprep.mubr.msk.bf16.mxu0 %vm3422_vm3, %v3421_v3 }
  0x4d   : > { %2875 = vmatmul.mubr.msk.bf16.vlgmr.msra.gmra.mrb[16].mxu1 %vm445_vm4, %v3556_v2  ;;  %v725_v2 = vsel %vm720_vm5, %v722_v24, %v724_v33  ;;  %v1055_v21 = vor.u32 %v1054_v15, %v1053_v14  ;;  %v1057_v24 = vrot.slane %v3610_v27, 1  ;;  %v1062_v33 = vrot.slane %v3622_v32, 2 }
  0x4e   : > { %2949 = vmatpush3.bf16.msra.mxu1 %v910_v26  ;;  %2878 = vmatprep.mubr.msk.bf16.mxu1 %vm3422_vm3, %v3421_v3  ;;  %v1058_v26 = vrot.slane %v3592_v18, 2  ;;  %v1248_v14 = vrot.slane %v3657_v47, 2 }
  0x4f   : > { %3024 = vmatprep.subr.bf16.mxu1 %v3421_v3 }
  0x50   : > { %v1059_v29 = vor.u32 %v1058_v26, %v1057_v24  ;;  %v1252_v24 = vrot.slane %v3577_v12, 2 }
  0x53   : > { %2913 = vmatmul.mubr.msk.bf16.vlgmr.msra.gmra.mrb[20].mxu0 %vm445_vm4, %v723_v30  ;;  %v1060_v30 = vsel %vm1037_vm6, %v1055_v21, %v1059_v29 }
  0x54   : > { %2987 = vmatpush3.bf16.msra.mxu0 %v1115_v31  ;;  %2916 = vmatprep.mubr.msk.bf16.mxu0 %vm3422_vm3, %v3421_v3  ;;  %v1061_v31 = vrot.slane %v3645_v41, 1 }
  0x55   : > { %3062 = vmatprep.subr.bf16.mxu0 %v3421_v3  ;;  %2879 = vmatmul.mubr.msk.bf16.gmra.mrb[20].mxu1 %vm445_vm4, %v3562_v5 }
  0x56   : > { %2882 = vmatprep.mubr.msk.bf16.mxu1 %vm3422_vm3, %v3421_v3 }
  0x5b   : > { %2917 = vmatmul.mubr.msk.bf16.gmra.mrb[24].mxu0 %vm445_vm4, %v725_v2 }
  0x5c   : > { %2920 = vmatprep.mubr.msk.bf16.mxu0 %vm3422_vm3, %v3421_v3 }
  0x5d   : > { %2883 = vmatmul.mubr.msk.bf16.gmra.mrb[24].mxu1 %vm445_vm4, %v3580_v13 }
  0x5e   : > { %2886 = vmatprep.mubr.msk.bf16.mxu1 %vm3422_vm3, %v3421_v3 }
  0x63   : > { %2921 = vmatmul.mubr.msk.bf16.gmra.mrb[28].mxu0 %vm445_vm4, %v727_v35 }
  0x64   : > { %2924 = vmatprep.mubr.msk.bf16.mxu0 %vm3422_vm3, %v3421_v3 }
  0x65   : > { %2887 = vmatmul.mubr.msk.bf16.gmra.mrb[28].mxu1 %vm445_vm4, %v3613_v28 }
  0x66   : > { %2890 = vmatprep.mubr.msk.bf16.mxu1 %vm3422_vm3, %v3421_v3 }
  0x6b   : > { %2925 = vmatmul.mubr.msk.bf16.gmra.mrb[32].mxu0 %vm445_vm4, %v729_v38 }
  0x6c   : > { %2928 = vmatprep.mubr.msk.bf16.mxu0 %vm3422_vm3, %v3421_v3 }
  0x6d   : > { %2891 = vmatmul.mubr.msk.bf16.gmra.mrb[32].mxu1 %vm445_vm4, %v3657_v47 }
  0x6e   : > { %2894 = vmatprep.mubr.msk.bf16.mxu1 %vm3422_vm3, %v3421_v3 }
  0x73   : > { %2929 = vmatmul.mubr.msk.bf16.gmra.mrb[36].mxu0 %vm445_vm4, %v731_v44 }
  0x74   : > { %2932 = vmatprep.mubr.msk.bf16.mxu0 %vm3422_vm3, %v3421_v3 }
  0x75   : > { %2895 = vmatmul.mubr.msk.bf16.gmra.mrb[36].mxu1 %vm445_vm4, %v3574_v11 }
  0x76   : > { %2898 = vmatprep.mubr.msk.bf16.mxu1 %vm3422_vm3, %v3421_v3 }
  0x7b   : > { %2933 = vmatmul.mubr.msk.bf16.gmra.mrb[40].mxu0 %vm445_vm4, %v733_v46 }
  0x7c   : > { %2936 = vmatprep.mubr.msk.bf16.mxu0 %vm3422_vm3, %v3421_v3 }
  0x7d   : > { %2899 = vmatmul.mubr.msk.bf16.gmra.mrb[40].mxu1 %vm445_vm4, %v3577_v12 }
  0x7e   : > { %2902 = vmatprep.mubr.msk.bf16.mxu1 %vm3422_vm3, %v3421_v3 }
  0x83   : > { %2937 = vmatmul.mubr.msk.bf16.gmra.mrb[44].mxu0 %vm445_vm4, %v3796_v51 }
  0x84   : > { %2940 = vmatprep.mubr.msk.bf16.mxu0 %vm3422_vm3, %v3421_v3 }
  0x85   : > { %2903 = vmatmul.mubr.msk.bf16.gmra.mrb[44].mxu1 %vm445_vm4, %v3595_v19 }
  0x86   : > { %2906 = vmatprep.mubr.msk.bf16.mxu1 %vm3422_vm3, %v3421_v3 }
  0x8b   : > { %2941 = vmatmul.mubr.msk.bf16.gmra.mrb[48].mxu0 %vm445_vm4, %v3808_v52 }
  0x8c   : > { %2944 = vmatprep.mubr.msk.bf16.mxu0 %vm3422_vm3, %v3421_v3 }
  0x8d   : > { %2907 = vmatmul.mubr.msk.bf16.gmra.mrb[48].mxu1 %vm445_vm4, %v3630_v36 }
  0x8e   : > { %2950 = vmatprep.mubr.msk.bf16.mxu1 %vm3422_vm3, %v3421_v3 }
  0x93   : > { %2945 = vmatmul.mubr.msk.bf16.gmra.mrb[52].mxu0 %vm445_vm4, %v3682_v59  ;;  %v1044_v59 = vsel %vm1037_vm6, %v1040_v58, %v1043_v60  ;;  %v1050_v58 = vrot.slane %v3673_v55, 2  ;;  %v901_v60 = vrot.slane %v3908_v54, 1 }
  0x94   : > { %2988 = vmatprep.mubr.msk.bf16.mxu0 %vm3422_vm3, %v3421_v3 }
  0x95   : > { %2951 = vmatmul.mubr.msk.bf16.vlgmr.msra.gmra.mrb[52].mxu1 %vm445_vm4, %v725_v2  ;;  %v1051_v8 = vor.u32 %v1050_v58, %v1049_v49  ;;  %v1063_v2 = vor.u32 %v1062_v33, %v1061_v31  ;;  %v902_v0 = vsel %vm720_vm5, %v899_v20, %v901_v60  ;;  %v2711_v20 = vld [vmem:[%s4926_s1 + $0xe] sm:$0x3]  ;;  %v1246_v49 = vrot.slane %v3613_v28, 2 }
  0x96   : > { %3025 = vmatpush3.bf16.msra.mxu1 %v1290_v61  ;;  %2954 = vmatprep.mubr.msk.bf16.mxu1 %vm3422_vm3, %v3421_v3  ;;  %v1637_v58 = vsel %vm473_vm1, %v2711_v20, 0 }
  0x97   : > { %3100 = vmatprep.subr.bf16.mxu1 %v3421_v3  ;;  %v1052_v9 = vsel %vm1037_vm6, %v1047_v6, %v1051_v8  ;;  %v1056_v25 = vsel %vm1037_vm6, %v1051_v8, %v1055_v21  ;;  %v1064_v34 = vsel %vm1037_vm6, %v1059_v29, %v1063_v2  ;;  %v1244_v6 = vrot.slane %v3580_v13, 2 }
  0x98   : > { %v1249_v15 = vsel %vm1242_vm7, %v1246_v49, %v1248_v14  ;;  %v1250_v21 = vrot.slane %v3574_v11, 2  ;;  %v1254_v29 = vrot.slane %v3595_v19, 2 }
  0x99   : > { %v1247_v8 = vsel %vm1242_vm7, %v1244_v6, %v1246_v49 }
  0x9a   : > { %v1253_v26 = vsel %vm1242_vm7, %v1250_v21, %v1252_v24 }
  0x9b   : > { %2989 = vmatmul.mubr.msk.bf16.vlgmr.msra.gmra.mrb[56].mxu0 %vm445_vm4, %v1044_v59  ;;  %v1084_v59 = vrot.slane %v1082_v56, 2 }
  0x9c   : > { %3063 = vmatpush3.bf16.msra.mxu0 %v1432_v4  ;;  %2992 = vmatprep.mubr.msk.bf16.mxu0 %vm3422_vm3, %v3421_v3  ;;  %v1243_v4 = vrot.slane %v3562_v5, 2  ;;  %v2721_v5 = vld [vmem:[%s4926_s1 + $0x10] sm:$0x3] }
  0x9d   : > { %3138 = vmatprep.subr.bf16.mxu0 %v3421_v3  ;;  %2955 = vmatmul.mubr.msk.bf16.gmra.mrb[56].mxu1 %vm445_vm4, %v727_v35  ;;  %v1065_v35 = vrot.slane %v3691_v63, 1  ;;  %v1085_v1 = vor.u32 %v1084_v59, %v1081_v62 }
  0x9e   : > { %2958 = vmatprep.mubr.msk.bf16.mxu1 %vm3422_vm3, %v3421_v3 }
  0xa3   : > { %2993 = vmatmul.mubr.msk.bf16.gmra.mrb[60].mxu0 %vm445_vm4, %v1048_v48  ;;  %v1245_v48 = vsel %vm1242_vm7, %v1243_v4, %v1244_v6 }
  0xa4   : > { %2996 = vmatprep.mubr.msk.bf16.mxu0 %vm3422_vm3, %v3421_v3 }
  0xa5   : > { %2959 = vmatmul.mubr.msk.bf16.gmra.mrb[60].mxu1 %vm445_vm4, %v729_v38  ;;  %v1067_v38 = vor.u32 %v1066_v37, %v1065_v35 }
  0xa6   : > { %2962 = vmatprep.mubr.msk.bf16.mxu1 %vm3422_vm3, %v3421_v3 }
  0xab   : > { %2997 = vmatmul.mubr.msk.bf16.gmra.mrb[64].mxu0 %vm445_vm4, %v1052_v9  ;;  %v1812_v9 = vsel %vm473_vm1, %v2721_v5, 0 }
  0xac   : > { %3000 = vmatprep.mubr.msk.bf16.mxu0 %vm3422_vm3, %v3421_v3 }
  0xad   : > { %2963 = vmatmul.mubr.msk.bf16.gmra.mrb[64].mxu1 %vm445_vm4, %v731_v44  ;;  %v1073_v44 = vshll.u32 %v3704_v10, 16 }
  0xae   : > { %2966 = vmatprep.mubr.msk.bf16.mxu1 %vm3422_vm3, %v3421_v3 }
  0xb3   : > { %3001 = vmatmul.mubr.msk.bf16.gmra.mrb[68].mxu0 %vm445_vm4, %v1056_v25  ;;  %v1251_v25 = vsel %vm1242_vm7, %v1248_v14, %v1250_v21 }
  0xb4   : > { %3004 = vmatprep.mubr.msk.bf16.mxu0 %vm3422_vm3, %v3421_v3 }
  0xb5   : > { %2967 = vmatmul.mubr.msk.bf16.gmra.mrb[68].mxu1 %vm445_vm4, %v733_v46  ;;  %v1068_v46 = vsel %vm1037_vm6, %v1063_v2, %v1067_v38  ;;  %v1255_v2 = vsel %vm1242_vm7, %v1252_v24, %v1254_v29  ;;  %v1260_v24 = vrot.slane %v3908_v54, 2 }
  0xb6   : > { %2970 = vmatprep.mubr.msk.bf16.mxu1 %vm3422_vm3, %v3421_v3 }
  0xbb   : > { %3005 = vmatmul.mubr.msk.bf16.gmra.mrb[72].mxu0 %vm445_vm4, %v1060_v30 }
  0xbc   : > { %3008 = vmatprep.mubr.msk.bf16.mxu0 %vm3422_vm3, %v3421_v3 }
  0xbd   : > { %2971 = vmatmul.mubr.msk.bf16.gmra.mrb[72].mxu1 %vm445_vm4, %v3796_v51  ;;  %v1075_v51 = vrot.slane %v1073_v44, 2 }
  0xbe   : > { %2974 = vmatprep.mubr.msk.bf16.mxu1 %vm3422_vm3, %v3421_v3 }
  0xc3   : > { %3009 = vmatmul.mubr.msk.bf16.gmra.mrb[76].mxu0 %vm445_vm4, %v1064_v34 }
  0xc4   : > { %3012 = vmatprep.mubr.msk.bf16.mxu0 %vm3422_vm3, %v3421_v3 }
  0xc5   : > { %2975 = vmatmul.mubr.msk.bf16.gmra.mrb[76].mxu1 %vm445_vm4, %v3808_v52  ;;  %v1076_v52 = vor.u32 %v1075_v51, %v1072_v50 }
  0xc6   : > { %2978 = vmatprep.mubr.msk.bf16.mxu1 %vm3422_vm3, %v3421_v3 }
  0xc7   : > { %v1077_v61 = vsel %vm1037_vm6, %v1067_v38, %v1076_v52 }
  0xcb   : > { %3013 = vmatmul.mubr.msk.bf16.gmra.mrb[80].mxu0 %vm445_vm4, %v1068_v46  ;;  %v1256_v46 = vrot.slane %v3630_v36, 2 }
  0xcc   : > { %3016 = vmatprep.mubr.msk.bf16.mxu0 %vm3422_vm3, %v3421_v3 }
  0xcd   : > { %2979 = vmatmul.mubr.msk.bf16.gmra.mrb[80].mxu1 %vm445_vm4, %v3723_v23  ;;  %v1086_v23 = vsel %vm1037_vm6, %v1076_v52, %v1085_v1  ;;  %v1257_v56 = vsel %vm1242_vm7, %v1254_v29, %v1256_v46  ;;  %v4040_v29 = vld [vmem:[%s3545_s16 + $0x58] ss:$0 sps:$4 sm:$0xff]  }
  0xce   : > { %2982 = vmatprep.mubr.msk.bf16.mxu1 %vm3422_vm3, %v3421_v3 }
  0xd3   : > { %3017 = vmatmul.mubr.msk.bf16.gmra.mrb[84].mxu0 %vm445_vm4, %v1077_v61 }
  0xd4   : > { %3020 = vmatprep.mubr.msk.bf16.mxu0 %vm3422_vm3, %v3421_v3 }
  0xd5   : > { %2983 = vmatmul.mubr.msk.bf16.gmra.mrb[84].mxu1 %vm445_vm4, %v902_v0  ;;  %v1258_v0 = vrot.slane %v3704_v10, 2 }
  0xd6   : > { %3026 = vmatprep.mubr.msk.bf16.mxu1 %vm3422_vm3, %v3421_v3 }
  0xd7   : > { %v1261_v54 = vsel %vm1242_vm7, %v1258_v0, %v1260_v24  ;;  %v1568_v24 = vrot.slane %v3673_v55, 3 }
  0xdb   : > { %3021 = vmatmul.mubr.msk.bf16.gmra.mrb[88].mxu0 %vm445_vm4, %v1086_v23  ;;  %v330_v23 = vld [vmem:[%s3545_s16 + $0x54] sm:$0xf] }
  0xdc   : > { %3064 = vmatprep.mubr.msk.bf16.mxu0 %vm3422_vm3, %v3421_v3  ;;  %v4020_v49 = vcombine.low %v3897_v45, %v330_v23 }
  0xdd   : > { %3027 = vmatmul.mubr.msk.bf16.vlgmr.msra.gmra.mrb[88].mxu1 %vm445_vm4, %v1245_v48  ;;  %v1259_v48 = vsel %vm1242_vm7, %v1256_v46, %v1258_v0  ;;  %v1561_v46 = vrot.slane %v3600_v22, 3 }
  0xde   : > { %3101 = vmatpush3.bf16.msra.mxu1 %v1637_v58  ;;  %3030 = vmatprep.mubr.msk.bf16.mxu1 %vm3422_vm3, %v3421_v3  ;;  %v1421_v14 = vrot.slane %v4020_v49, 2 }
  0xe3   : > { %3065 = vmatmul.mubr.msk.bf16.vlgmr.msra.gmra.mrb[92].mxu0 %vm445_vm4, %v1247_v8 }
  0xe4   : > { %3139 = vmatpush3.bf16.msra.mxu0 %v1812_v9  ;;  %3068 = vmatprep.mubr.msk.bf16.mxu0 %vm3422_vm3, %v3421_v3 }
  0xe5   : > { %3031 = vmatmul.mubr.msk.bf16.gmra.mrb[92].mxu1 %vm445_vm4, %v1247_v8 }
  0xe6   : > { %3034 = vmatprep.mubr.msk.bf16.mxu1 %vm3422_vm3, %v3421_v3 }
  0xeb   : > { %3069 = vmatmul.mubr.msk.bf16.gmra.mrb[96].mxu0 %vm445_vm4, %v1249_v15 }
  0xec   : > { %3072 = vmatprep.mubr.msk.bf16.mxu0 %vm3422_vm3, %v3421_v3 }
  0xed   : > { %3035 = vmatmul.mubr.msk.bf16.gmra.mrb[96].mxu1 %vm445_vm4, %v1249_v15 }
  0xee   : > { %3038 = vmatprep.mubr.msk.bf16.mxu1 %vm3422_vm3, %v3421_v3 }
  0xf3   : > { %3073 = vmatmul.mubr.msk.bf16.gmra.mrb[100].mxu0 %vm445_vm4, %v1251_v25 }
  0xf4   : > { %3076 = vmatprep.mubr.msk.bf16.mxu0 %vm3422_vm3, %v3421_v3 }
  0xf5   : > { %3039 = vmatmul.mubr.msk.bf16.gmra.mrb[100].mxu1 %vm445_vm4, %v1251_v25 }
  0xf6   : > { %3042 = vmatprep.mubr.msk.bf16.mxu1 %vm3422_vm3, %v3421_v3 }
  0xfb   : > { %3077 = vmatmul.mubr.msk.bf16.gmra.mrb[104].mxu0 %vm445_vm4, %v1253_v26 }
  0xfc   : > { %3080 = vmatprep.mubr.msk.bf16.mxu0 %vm3422_vm3, %v3421_v3 }
  0xfd   : > { %3043 = vmatmul.mubr.msk.bf16.gmra.mrb[104].mxu1 %vm445_vm4, %v1253_v26  ;;  %v1422_v26 = vsel %vm1242_vm7, %v1258_v0, %v1421_v14 }
  0xfe   : > { %v3978_v30 = vpop.f32.mrb[0].mxu0  ;;  %3046 = vmatprep.mubr.msk.bf16.mxu1 %vm3422_vm3, %v3421_v3 }
  0xff   : > { %v2838_v31 = vpop.f32.mrb[1].mxu0 }
 0x100   : > { %v3981_v33 = vpop.f32.mrb[2].mxu0  ;;  %v3986_v35 = vpop.f32.mrb[0].mxu1 }
 0x101   : > { %v2839_v34 = vpop.f32.mrb[3].mxu0  ;;  %v2858_v37 = vpop.f32.mrb[1].mxu1 }
 0x102   : > { %v3989_v38 = vpop.f32.mrb[2].mxu1  ;;  %v1560_v37 = vrot.slane %v3637_v39, 2 }
 0x103   : > { %3081 = vmatmul.mubr.msk.bf16.gmra.mrb[108].mxu0 %vm445_vm4, %v1255_v2  ;;  %v2859_v50 = vpop.f32.mrb[3].mxu1 }
 0x104   : > { %3084 = vmatprep.mubr.msk.bf16.mxu0 %vm3422_vm3, %v3421_v3  ;;  %v1563_v50 = vrot.slane %v3667_v53, 2  ;;  %v1562_v22 = vor.u32 %v1561_v46, %v1560_v37 }
 0x105   : > { %3047 = vmatmul.mubr.msk.bf16.gmra.mrb[108].mxu1 %vm445_vm4, %v1255_v2 }
 0x106   : > { %v3994_v51 = vpop.f32.mrb[4].mxu0  ;;  %3050 = vmatprep.mubr.msk.bf16.mxu1 %vm3422_vm3, %v3421_v3 }
 0x107   : > { %v2842_v52 = vpop.f32.mrb[5].mxu0 }
 0x108   : > { %v3997_v57 = vpop.f32.mrb[6].mxu0  ;;  %v4002_v61 = vpop.f32.mrb[4].mxu1  ;;  %v1564_v52 = vrot.slane %v3640_v40, 3 }
 0x109   : > { %v2843_v60 = vpop.f32.mrb[7].mxu0  ;;  %v2862_v62 = vpop.f32.mrb[5].mxu1 }
 0x10a   : > { %v4005_v59 = vpop.f32.mrb[6].mxu1  ;;  %v1423_v60 = vrot.slane %v4040_v29, 2  ;;  %v1565_v23 = vor.u32 %v1564_v52, %v1563_v50 }
 0x10b   : > { %3085 = vmatmul.mubr.msk.bf16.gmra.mrb[112].mxu0 %vm445_vm4, %v1257_v56  ;;  %v2863_v1 = vpop.f32.mrb[7].mxu1 }
 0x10c   : > { %3088 = vmatprep.mubr.msk.bf16.mxu0 %vm3422_vm3, %v3421_v3  ;;  %v1424_v40 = vsel %vm1242_vm7, %v1421_v14, %v1423_v60  ;;  %v1765_v14 = vrot.slane %v3580_v13, 3 }
 0x10d   : > { %3051 = vmatmul.mubr.msk.bf16.gmra.mrb[112].mxu1 %vm445_vm4, %v1257_v56 }
 0x10e   : > { %v4011_v4 = vpop.f32.mrb[8].mxu0  ;;  %3054 = vmatprep.mubr.msk.bf16.mxu1 %vm3422_vm3, %v3421_v3 }
 0x10f   : > { %v2846_v6 = vpop.f32.mrb[9].mxu0 }
 0x110   : > { %v4014_v20 = vpop.f32.mrb[10].mxu0  ;;  %v4022_v5 = vpop.f32.mrb[8].mxu1 }
 0x111   : > { %v2847_v58 = vpop.f32.mrb[11].mxu0  ;;  %v2866_v8 = vpop.f32.mrb[9].mxu1 }
 0x112   : > { %v4025_v9 = vpop.f32.mrb[10].mxu1  ;;  %v1566_v8 = vsel %vm1559_vm8, %v1562_v22, %v1565_v23  ;;  %v1572_v22 = vrot.slane %v3586_v16, 3 }
 0x113   : > { %3089 = vmatmul.mubr.msk.bf16.gmra.mrb[116].mxu0 %vm445_vm4, %v1259_v48  ;;  %v2867_v15 = vpop.f32.mrb[11].mxu1 }
 0x114   : > { %3092 = vmatprep.mubr.msk.bf16.mxu0 %vm3422_vm3, %v3421_v3 }
 0x115   : > { %3055 = vmatmul.mubr.msk.bf16.gmra.mrb[116].mxu1 %vm445_vm4, %v1259_v48 }
 0x116   : > { %v4030_v21 = vpop.f32.mrb[12].mxu0  ;;  %3058 = vmatprep.mubr.msk.bf16.mxu1 %vm3422_vm3, %v3421_v3 }
 0x117   : > { %v2850_v45 = vpop.f32.mrb[13].mxu0 }
 0x118   : > { %v4033_v25 = vpop.f32.mrb[14].mxu0  ;;  %v4042_v2 = vpop.f32.mrb[12].mxu1  ;;  %v1567_v45 = vrot.slane %v3699_v7, 2 }
 0x119   : > { %v2851_v31 = vpop.f32.mrb[15].mxu0  ;;  %v2870_v34 = vpop.f32.mrb[13].mxu1 }
 0x11a   : > { %v4049_v56 = vpop.f32.mrb[14].mxu1  ;;  %v1569_v7 = vor.u32 %v1568_v24, %v1567_v45 }
 0x11b   : > { %3093 = vmatmul.mubr.msk.bf16.gmra.mrb[120].mxu0 %vm445_vm4, %v1422_v26  ;;  %v2871_v62 = vpop.f32.mrb[15].mxu1  ;;  %v1766_v26 = vrot.slane %v3613_v28, 3 }
 0x11c   : > { %3096 = vmatprep.mubr.msk.bf16.mxu0 %vm3422_vm3, %v3421_v3  ;;  %v1570_v62 = vsel %vm1559_vm8, %v1565_v23, %v1569_v7 }
 0x11d   : > { %3059 = vmatmul.mubr.msk.bf16.gmra.mrb[120].mxu1 %vm445_vm4, %v1261_v54  ;;  %v1767_v55 = vsel %vm1764_vm9, %v1765_v14, %v1766_v26 }
 0x11e   : > { %v4055_v1 = vpop.f32.mrb[16].mxu0  ;;  %3102 = vmatprep.mubr.msk.bf16.mxu1 %vm3422_vm3, %v3421_v3 }
 0x11f   : > { %v2854_v39 = vpop.f32.mrb[17].mxu0 }
 0x120   : > { %v4058_v53 = vpop.f32.mrb[18].mxu0  ;;  %v637_v6 = vpop.f32.mrb[16].mxu1  ;;  %v1571_v39 = vrot.slane %v3589_v17, 2 }
 0x121   : > { %v2855_v0 = vpop.f32.mrb[19].mxu0  ;;  %v638_v48 = vadd.f32 %v637_v6, %v3978_v30  ;;  %v2876_v58 = vpop.f32.mrb[17].mxu1 }
 0x122   : > { %v640_v15 = vpop.f32.mrb[18].mxu1  ;;  %v1573_v23 = vor.u32 %v1572_v22, %v1571_v39  ;;  %v1580_v39 = vrot.slane %v3622_v32, 3  ;;  %v1772_v22 = vrot.slane %v3577_v12, 3 }
 0x123   : > { %3097 = vmatmul.mubr.msk.bf16.gmra.mrb[124].mxu0 %vm445_vm4, %v1424_v40  ;;  %v641_v31 = vadd.f32 %v640_v15, %v3981_v33  ;;  %v2877_v30 = vpop.f32.mrb[19].mxu1  ;;  %v1768_v40 = vrot.slane %v3657_v47, 3 }
 0x124   : > { %3140 = vmatprep.mubr.msk.bf16.mxu0 %vm3422_vm3, %v3421_v3  ;;  %v1574_v14 = vsel %vm1559_vm8, %v1569_v7, %v1573_v23  ;;  %v1576_v30 = vrot.slane %v3592_v18, 3 }
 0x125   : > { %3103 = vmatmul.mubr.msk.bf16.vlgmr.msra.gmra.mrb[124].mxu1 %vm445_vm4, %v1566_v8  ;;  %v1769_v17 = vsel %vm1764_vm9, %v1766_v26, %v1768_v40  ;;  %v1770_v26 = vrot.slane %v3574_v11, 3 }
 0x126   : > { %v804_v34 = vpop.f32.mrb[20].mxu0  ;;  %3106 = vmatprep.mubr.msk.bf16.mxu1 %vm3422_vm3, %v3421_v3 }
 0x127   : > { %v4074_v37 = vadd.f32 %v804_v34, %v638_v48  ;;  %v2914_v46 = vpop.f32.mrb[21].mxu0 }
 0x128   : > { %v807_v50 = vpop.f32.mrb[22].mxu0  ;;  %v645_v52 = vpop.f32.mrb[20].mxu1 }
 0x129   : > { %v4079_v13 = vadd.f32 %v807_v50, %v641_v31  ;;  %v2915_v28 = vpop.f32.mrb[23].mxu0  ;;  %v646_v33 = vadd.f32 %v645_v52, %v3994_v51  ;;  %v2880_v54 = vpop.f32.mrb[21].mxu1  ;;  %v1575_v31 = vrot.slane %v3610_v27, 2  ;;  %v1771_v27 = vsel %vm1764_vm9, %v1768_v40, %v1770_v26 }
 0x12a   : > { %v648_v60 = vpop.f32.mrb[22].mxu1 }
 0x12b   : > { %3141 = vmatmul.mubr.msk.bf16.vlgmr.msra.gmra.mrb[128].mxu0 %vm445_vm4, %v1767_v55  ;;  %v649_v0 = vadd.f32 %v648_v60, %v3997_v57  ;;  %v2881_v6 = vpop.f32.mrb[23].mxu1  ;;  %v1577_v7 = vor.u32 %v1576_v30, %v1575_v31 }
 0x12c   : > { %3144 = vmatprep.mubr.msk.bf16.mxu0 %vm3422_vm3, %v3421_v3 }
 0x12d   : > { %3107 = vmatmul.mubr.msk.bf16.gmra.mrb[128].mxu1 %vm445_vm4, %v1570_v62  ;;  %v1578_v60 = vsel %vm1559_vm8, %v1573_v23, %v1577_v7  ;;  %v1579_v62 = vrot.slane %v3645_v41, 2  ;;  %v1773_v41 = vsel %vm1764_vm9, %v1770_v26, %v1772_v22 }
 0x12e   : > { %v812_v48 = vpop.f32.mrb[24].mxu0  ;;  %3110 = vmatprep.mubr.msk.bf16.mxu1 %vm3422_vm3, %v3421_v3 }
 0x12f   : > { %v4091_v51 = vadd.f32 %v812_v48, %v646_v33  ;;  %v2918_v58 = vpop.f32.mrb[25].mxu0 }
 0x130   : > { %v815_v8 = vpop.f32.mrb[26].mxu0  ;;  %v653_v47 = vpop.f32.mrb[24].mxu1 }
 0x131   : > { %v4096_v15 = vadd.f32 %v815_v8, %v649_v0  ;;  %v2919_v16 = vpop.f32.mrb[27].mxu0  ;;  %v654_v57 = vadd.f32 %v653_v47, %v4011_v4  ;;  %v2884_v45 = vpop.f32.mrb[25].mxu1  ;;  %v1581_v8 = vor.u32 %v1580_v39, %v1579_v62 }
 0x132   : > { %v656_v24 = vpop.f32.mrb[26].mxu1  ;;  %v1584_v45 = vrot.slane %v3648_v42, 3 }
 0x133   : > { %3145 = vmatmul.mubr.msk.bf16.gmra.mrb[132].mxu0 %vm445_vm4, %v1769_v17  ;;  %v657_v34 = vadd.f32 %v656_v24, %v4014_v20  ;;  %v2885_v46 = vpop.f32.mrb[27].mxu1  ;;  %v1582_v47 = vsel %vm1559_vm8, %v1577_v7, %v1581_v8  ;;  %v1774_v24 = vrot.slane %v3595_v19, 3 }
 0x134   : > { %3148 = vmatprep.mubr.msk.bf16.mxu0 %vm3422_vm3, %v3421_v3 }
 0x135   : > { %3111 = vmatmul.mubr.msk.bf16.gmra.mrb[132].mxu1 %vm445_vm4, %v1574_v14 }
 0x136   : > { %v820_v50 = vpop.f32.mrb[28].mxu0  ;;  %3114 = vmatprep.mubr.msk.bf16.mxu1 %vm3422_vm3, %v3421_v3 }
 0x137   : > { %v4108_v4 = vadd.f32 %v820_v50, %v654_v57  ;;  %v2922_v55 = vpop.f32.mrb[29].mxu0  ;;  %v1583_v57 = vrot.slane %v3691_v63, 2  ;;  %v1775_v63 = vsel %vm1764_vm9, %v1772_v22, %v1774_v24 }
 0x138   : > { %v823_v28 = vpop.f32.mrb[30].mxu0  ;;  %v661_v11 = vpop.f32.mrb[28].mxu1 }
 0x139   : > { %v4113_v52 = vadd.f32 %v823_v28, %v657_v34  ;;  %v2923_v18 = vpop.f32.mrb[31].mxu0  ;;  %v662_v20 = vadd.f32 %v661_v11, %v4030_v21  ;;  %v2888_v33 = vpop.f32.mrb[29].mxu1  ;;  %v1585_v46 = vor.u32 %v1584_v45, %v1583_v57  ;;  %v1776_v11 = vrot.slane %v3630_v36, 3 }
 0x13a   : > { %v664_v54 = vpop.f32.mrb[30].mxu1  ;;  %v1588_v18 = vrot.slane %v1073_v44, 3  ;;  %v1592_v44 = vshrl.u32 %v4020_v49, 16  ;;  %v1595_v36 = vshll.u32 %v4020_v49, 16 }
 0x13b   : > { %3149 = vmatmul.mubr.msk.bf16.gmra.mrb[136].mxu0 %vm445_vm4, %v1771_v27  ;;  %v665_v40 = vadd.f32 %v664_v54, %v4033_v25  ;;  %v2889_v0 = vpop.f32.mrb[31].mxu1  ;;  %v1586_v7 = vsel %vm1559_vm8, %v1581_v8, %v1585_v46  ;;  %v1587_v27 = vrot.slane %v1070_v43, 2  ;;  %v1777_v43 = vsel %vm1764_vm9, %v1774_v24, %v1776_v11 }
 0x13c   : > { %3152 = vmatprep.mubr.msk.bf16.mxu0 %vm3422_vm3, %v3421_v3  ;;  %v1594_v8 = vrot.slane %v1592_v44, 2  ;;  %v1601_v24 = vshrl.u32 %v4040_v29, 16 }
 0x13d   : > { %3115 = vmatmul.mubr.msk.bf16.gmra.mrb[136].mxu1 %vm445_vm4, %v1578_v60  ;;  %v1589_v39 = vor.u32 %v1588_v18, %v1587_v27 }
 0x13e   : > { %v828_v6 = vpop.f32.mrb[32].mxu0  ;;  %3118 = vmatprep.mubr.msk.bf16.mxu1 %vm3422_vm3, %v3421_v3 }
 0x13f   : > { %v4125_v21 = vadd.f32 %v828_v6, %v662_v20  ;;  %v2926_v48 = vpop.f32.mrb[33].mxu0 }
 0x140   : > { %v831_v58 = vpop.f32.mrb[34].mxu0  ;;  %v669_v12 = vpop.f32.mrb[32].mxu1 }
 0x141   : > { %v4130_v23 = vadd.f32 %v831_v58, %v665_v40  ;;  %v2927_v32 = vpop.f32.mrb[35].mxu0  ;;  %v670_v25 = vadd.f32 %v669_v12, %v4055_v1  ;;  %v2892_v17 = vpop.f32.mrb[33].mxu1  ;;  %v1590_v58 = vsel %vm1559_vm8, %v1585_v46, %v1589_v39 }
 0x142   : > { %v672_v16 = vpop.f32.mrb[34].mxu1  ;;  %v1778_v32 = vrot.slane %v3704_v10, 3  ;;  %v1604_v10 = vshll.u32 %v4040_v29, 16 }
 0x143   : > { %3153 = vmatmul.mubr.msk.bf16.gmra.mrb[140].mxu0 %vm445_vm4, %v1773_v41  ;;  %v673_v14 = vadd.f32 %v672_v16, %v4058_v53  ;;  %v2893_v31 = vpop.f32.mrb[35].mxu1  ;;  %v1597_v41 = vrot.slane %v1595_v36, 3 }
 0x144   : > { %3156 = vmatprep.mubr.msk.bf16.mxu0 %vm3422_vm3, %v3421_v3  ;;  %v1779_v45 = vsel %vm1764_vm9, %v1776_v11, %v1778_v32 }
 0x145   : > { %3119 = vmatmul.mubr.msk.bf16.gmra.mrb[140].mxu1 %vm445_vm4, %v1582_v47  ;;  %v1598_v57 = vor.u32 %v1597_v41, %v1594_v8 }
 0x146   : > { %v836_v30 = vpop.f32.mrb[36].mxu0  ;;  %3122 = vmatprep.mubr.msk.bf16.mxu1 %vm3422_vm3, %v3421_v3 }
 0x147   : > { %v4142_v1 = vadd.f32 %v836_v30, %v670_v25  ;;  %v2930_v26 = vpop.f32.mrb[37].mxu0  ;;  %v1599_v46 = vsel %vm1559_vm8, %v1589_v39, %v1598_v57  ;;  %v1782_v39 = vrot.slane %v4040_v29, 3 }
 0x148   : > { %v839_v34 = vpop.f32.mrb[38].mxu0  ;;  %v677_v19 = vpop.f32.mrb[36].mxu1 }
 0x149   : > { %v4147_v50 = vadd.f32 %v839_v34, %v673_v14  ;;  %v2931_v42 = vpop.f32.mrb[39].mxu0  ;;  %v678_v53 = vadd.f32 %v677_v19, %v3986_v35  ;;  %v2896_v55 = vpop.f32.mrb[37].mxu1  ;;  %v1780_v19 = vrot.slane %v4020_v49, 3 }
 0x14a   : > { %v680_v28 = vpop.f32.mrb[38].mxu1  ;;  %v1606_v42 = vrot.slane %v1604_v10, 3 }
 0x14b   : > { %3157 = vmatmul.mubr.msk.bf16.gmra.mrb[144].mxu0 %vm445_vm4, %v1775_v63  ;;  %v681_v20 = vadd.f32 %v680_v28, %v3989_v38  ;;  %v2897_v35 = vpop.f32.mrb[39].mxu1  ;;  %v1603_v63 = vrot.slane %v1601_v24, 2  ;;  %v1781_v11 = vsel %vm1764_vm9, %v1778_v32, %v1780_v19 }
 0x14c   : > { %3160 = vmatprep.mubr.msk.bf16.mxu0 %vm3422_vm3, %v3421_v3 }
 0x14d   : > { %3123 = vmatmul.mubr.msk.bf16.gmra.mrb[144].mxu1 %vm445_vm4, %v1586_v7  ;;  %v1607_v18 = vor.u32 %v1606_v42, %v1603_v63 }
 0x14e   : > { %v844_v33 = vpop.f32.mrb[40].mxu0  ;;  %3126 = vmatprep.mubr.msk.bf16.mxu1 %vm3422_vm3, %v3421_v3 }
 0x14f   : > { %v4161_v54 = vadd.f32 %v844_v33, %v678_v53  ;;  %v2934_v60 = vpop.f32.mrb[41].mxu0 }
 0x150   : > { %v847_v62 = vpop.f32.mrb[42].mxu0  ;;  %v685_v40 = vpop.f32.mrb[40].mxu1 }
 0x151   : > { %v4168_v22 = vadd.f32 %v847_v62, %v681_v20  ;;  %v2935_v38 = vpop.f32.mrb[43].mxu0  ;;  %v686_v0 = vadd.f32 %v685_v40, %v4002_v61  ;;  %v2900_v6 = vpop.f32.mrb[41].mxu1  ;;  %v1608_v62 = vsel %vm1559_vm8, %v1598_v57, %v1607_v18 }
 0x152   : > { %v688_v48 = vpop.f32.mrb[42].mxu1 }
 0x153   : > { %3161 = vmatmul.mubr.msk.bf16.gmra.mrb[148].mxu0 %vm445_vm4, %v1777_v43  ;;  %v689_v12 = vadd.f32 %v688_v48, %v4005_v59  ;;  %v2901_v25 = vpop.f32.mrb[43].mxu1 }
 0x154   : > { %3164 = vmatprep.mubr.msk.bf16.mxu0 %vm3422_vm3, %v3421_v3 }
 0x155   : > { %3127 = vmatmul.mubr.msk.bf16.gmra.mrb[148].mxu1 %vm445_vm4, %v1590_v58 }
 0x156   : > { %v852_v17 = vpop.f32.mrb[44].mxu0  ;;  %3130 = vmatprep.mubr.msk.bf16.mxu1 %vm3422_vm3, %v3421_v3 }
 0x157   : > { %v4178_v61 = vadd.f32 %v852_v17, %v686_v0  ;;  %v2938_v16 = vpop.f32.mrb[45].mxu0  ;;  %v1783_v0 = vsel %vm1764_vm9, %v1780_v19, %v1782_v39 }
 0x158   : > { %v855_v47 = vpop.f32.mrb[46].mxu0  ;;  %v693_v31 = vpop.f32.mrb[44].mxu1 }
 0x159   : > { %v4185_v14 = vadd.f32 %v855_v47, %v689_v12  ;;  %v2939_v59 = vpop.f32.mrb[47].mxu0  ;;  %v694_v30 = vadd.f32 %v693_v31, %v4022_v5  ;;  %v2904_v26 = vpop.f32.mrb[45].mxu1 }
 0x15a   : > { %v696_v34 = vpop.f32.mrb[46].mxu1 }
 0x15b   : > { %3165 = vmatmul.mubr.msk.bf16.gmra.mrb[152].mxu0 %vm445_vm4, %v1779_v45  ;;  %v697_v53 = vadd.f32 %v696_v34, %v4025_v9  ;;  %v2905_v55 = vpop.f32.mrb[47].mxu1 }
 0x15c   : > { %3168 = vmatprep.mubr.msk.bf16.mxu0 %vm3422_vm3, %v3421_v3 }
 0x15d   : > { %3131 = vmatmul.mubr.msk.bf16.gmra.mrb[152].mxu1 %vm445_vm4, %v1599_v46 }
 0x15e   : > { %v860_v28 = vpop.f32.mrb[48].mxu0  ;;  %3134 = vmatprep.mubr.msk.bf16.mxu1 %vm3422_vm3, %v3421_v3 }
 0x15f   : > { %v4195_v5 = vadd.f32 %v860_v28, %v694_v30  ;;  %v2942_v7 = vpop.f32.mrb[49].mxu0 }
 0x160   : > { %v863_v27 = vpop.f32.mrb[50].mxu0  ;;  %v701_v49 = vpop.f32.mrb[48].mxu1 }
 0x161   : > { %v4200_v20 = vadd.f32 %v863_v27, %v697_v53  ;;  %v2943_v35 = vpop.f32.mrb[51].mxu0  ;;  %v702_v9 = vadd.f32 %v701_v49, %v4042_v2  ;;  %v2908_v33 = vpop.f32.mrb[49].mxu1 }
 0x162   : > { %v704_v60 = vpop.f32.mrb[50].mxu1 }
 0x163   : > { %3169 = vmatmul.mubr.msk.bf16.gmra.mrb[156].mxu0 %vm445_vm4, %v1781_v11  ;;  %v705_v43 = vadd.f32 %v704_v60, %v4049_v56  ;;  %v2909_v44 = vpop.f32.mrb[51].mxu1 }
 0x164   : > { %3172 = vmatprep.mubr.msk.bf16.mxu0 %vm3422_vm3, %v3421_v3 }
 0x165   : > { %3135 = vmatmul.mubr.msk.bf16.gmra.mrb[156].mxu1 %vm445_vm4, %v1608_v62 }
 0x166   : > { %v868_v36 = vpop.f32.mrb[52].mxu0 }
 0x167   : > { %v4210_v38 = vadd.f32 %v868_v36, %v702_v9  ;;  %v2946_v2 = vpop.f32.mrb[53].mxu0 }
 0x168   : > { %v871_v40 = vpop.f32.mrb[54].mxu0  ;;  %v946_v58 = vpop.f32.mrb[52].mxu1 }
 0x169   : > { %v4213_v6 = vadd.f32 %v871_v40, %v705_v43  ;;  %v2947_v48 = vpop.f32.mrb[55].mxu0  ;;  %v1017_v3 = vadd.f32 %v946_v58, %v4074_v37  ;;  %v2952_v8 = vpop.f32.mrb[53].mxu1 }
 0x16a   : > { %v949_v29 = vpop.f32.mrb[54].mxu1 }
 0x16b   : > { %3173 = vmatmul.mubr.msk.bf16.gmra.mrb[160].mxu0 %vm445_vm4, %v1783_v0  ;;  %v1018_v56 = vadd.f32 %v949_v29, %v4079_v13  ;;  %v2953_v41 = vpop.f32.mrb[55].mxu1 }
 0x16e   : > { %v1151_v32 = vpop.f32.mrb[56].mxu0 }
 0x16f   : > { %v4218_v12 = vadd.f32 %v1151_v32, %v1017_v3  ;;  %v2990_v25 = vpop.f32.mrb[57].mxu0 }
 0x170   : > { %v1154_v17 = vpop.f32.mrb[58].mxu0  ;;  %v954_v57 = vpop.f32.mrb[56].mxu1 }
 0x171   : > { %v4220_v16 = vadd.f32 %v1154_v17, %v1018_v56  ;;  %v2991_v47 = vpop.f32.mrb[59].mxu0  ;;  %v1019_v45 = vadd.f32 %v954_v57, %v4091_v51  ;;  %v2956_v24 = vpop.f32.mrb[57].mxu1 }
 0x172   : > { %v957_v37 = vpop.f32.mrb[58].mxu1 }
 0x173   : > { %v1020_v10 = vadd.f32 %v957_v37, %v4096_v15  ;;  %v2957_v59 = vpop.f32.mrb[59].mxu1 }
 0x176   : > { %v1159_v31 = vpop.f32.mrb[60].mxu0 }
 0x177   : > { %v4224_v30 = vadd.f32 %v1159_v31, %v1019_v45  ;;  %v2994_v13 = vpop.f32.mrb[61].mxu0 }
 0x178   : > { %v1162_v26 = vpop.f32.mrb[62].mxu0  ;;  %v962_v63 = vpop.f32.mrb[60].mxu1 }
 0x179   : > { %v4226_v34 = vadd.f32 %v1162_v26, %v1020_v10  ;;  %v2995_v46 = vpop.f32.mrb[63].mxu0  ;;  %v1021_v42 = vadd.f32 %v962_v63, %v4108_v4  ;;  %v2960_v19 = vpop.f32.mrb[61].mxu1 }
 0x17a   : > { %v965_v53 = vpop.f32.mrb[62].mxu1 }
 0x17b   : > { %v1022_v51 = vadd.f32 %v965_v53, %v4113_v52  ;;  %v2961_v55 = vpop.f32.mrb[63].mxu1 }
 0x17e   : > { %v1167_v28 = vpop.f32.mrb[64].mxu0 }
 0x17f   : > { %v4230_v7 = vadd.f32 %v1167_v28, %v1021_v42  ;;  %v2998_v15 = vpop.f32.mrb[65].mxu0 }
 0x180   : > { %v1170_v27 = vpop.f32.mrb[66].mxu0  ;;  %v970_v35 = vpop.f32.mrb[64].mxu1 }
 0x181   : > { %v4232_v18 = vadd.f32 %v1170_v27, %v1022_v51  ;;  %v2999_v11 = vpop.f32.mrb[67].mxu0  ;;  %v1023_v49 = vadd.f32 %v970_v35, %v4125_v21  ;;  %v2964_v9 = vpop.f32.mrb[65].mxu1 }
 0x182   : > { %v973_v33 = vpop.f32.mrb[66].mxu1 }
 0x183   : > { %v1024_v4 = vadd.f32 %v973_v33, %v4130_v23  ;;  %v2965_v60 = vpop.f32.mrb[67].mxu1 }
 0x186   : > { %v1175_v62 = vpop.f32.mrb[68].mxu0 }
 0x187   : > { %v4236_v39 = vadd.f32 %v1175_v62, %v1023_v49  ;;  %v3002_v52 = vpop.f32.mrb[69].mxu0 }
 0x188   : > { %v1178_v43 = vpop.f32.mrb[70].mxu0  ;;  %v978_v2 = vpop.f32.mrb[68].mxu1 }
 0x189   : > { %v4238_v44 = vadd.f32 %v1178_v43, %v1024_v4  ;;  %v3003_v36 = vpop.f32.mrb[71].mxu0  ;;  %v1025_v40 = vadd.f32 %v978_v2, %v4142_v1  ;;  %v2968_v0 = vpop.f32.mrb[69].mxu1 }
 0x18a   : > { %v981_v48 = vpop.f32.mrb[70].mxu1 }
 0x18b   : > { %v1026_v21 = vadd.f32 %v981_v48, %v4147_v50  ;;  %v2969_v58 = vpop.f32.mrb[71].mxu1 }
 0x18e   : > { %v1183_v3 = vpop.f32.mrb[72].mxu0 }
 0x18f   : > { %v4242_v8 = vadd.f32 %v1183_v3, %v1025_v40  ;;  %v3006_v23 = vpop.f32.mrb[73].mxu0 }
 0x190   : > { %v1186_v29 = vpop.f32.mrb[74].mxu0  ;;  %v986_v32 = vpop.f32.mrb[72].mxu1 }
 0x191   : > { %v4244_v56 = vadd.f32 %v1186_v29, %v1026_v21  ;;  %v3007_v41 = vpop.f32.mrb[75].mxu0  ;;  %v1027_v25 = vadd.f32 %v986_v32, %v4161_v54  ;;  %v2972_v17 = vpop.f32.mrb[73].mxu1 }
 0x192   : > { %v989_v47 = vpop.f32.mrb[74].mxu1 }
 0x193   : > { %v1028_v1 = vadd.f32 %v989_v47, %v4168_v22  ;;  %v2973_v57 = vpop.f32.mrb[75].mxu1 }
 0x196   : > { %v1191_v45 = vpop.f32.mrb[76].mxu0 }
 0x197   : > { %v4248_v24 = vadd.f32 %v1191_v45, %v1027_v25  ;;  %v3010_v50 = vpop.f32.mrb[77].mxu0 }
 0x198   : > { %v1194_v37 = vpop.f32.mrb[78].mxu0  ;;  %v994_v31 = vpop.f32.mrb[76].mxu1 }
 0x199   : > { %v4250_v10 = vadd.f32 %v1194_v37, %v1028_v1  ;;  %v3011_v59 = vpop.f32.mrb[79].mxu0  ;;  %v1029_v13 = vadd.f32 %v994_v31, %v4178_v61  ;;  %v2976_v26 = vpop.f32.mrb[77].mxu1 }
 0x19a   : > { %v997_v46 = vpop.f32.mrb[78].mxu1 }
 0x19b   : > { %v1030_v54 = vadd.f32 %v997_v46, %v4185_v14  ;;  %v2977_v63 = vpop.f32.mrb[79].mxu1 }
 0x19e   : > { %v1199_v42 = vpop.f32.mrb[80].mxu0 }
 0x19f   : > { %v4254_v19 = vadd.f32 %v1199_v42, %v1029_v13  ;;  %v3014_v22 = vpop.f32.mrb[81].mxu0 }
 0x1a0   : > { %v1202_v53 = vpop.f32.mrb[82].mxu0  ;;  %v1002_v28 = vpop.f32.mrb[80].mxu1 }
 0x1a1   : > { %v4256_v51 = vadd.f32 %v1202_v53, %v1030_v54  ;;  %v3015_v55 = vpop.f32.mrb[83].mxu0  ;;  %v1031_v15 = vadd.f32 %v1002_v28, %v4195_v5  ;;  %v2980_v27 = vpop.f32.mrb[81].mxu1 }
 0x1a2   : > { %v1005_v11 = vpop.f32.mrb[82].mxu1 }
 0x1a3   : > { %v1032_v61 = vadd.f32 %v1005_v11, %v4200_v20  ;;  %v2981_v35 = vpop.f32.mrb[83].mxu1 }
 0x1a6   : > { %v1207_v49 = vpop.f32.mrb[84].mxu0 }
 0x1a7   : > { %v4260_v9 = vadd.f32 %v1207_v49, %v1031_v15  ;;  %v3018_v14 = vpop.f32.mrb[85].mxu0 }
 0x1a8   : > { %v1210_v33 = vpop.f32.mrb[86].mxu0  ;;  %v1010_v62 = vpop.f32.mrb[84].mxu1 }
 0x1a9   : > { %v4262_v4 = vadd.f32 %v1210_v33, %v1032_v61  ;;  %v3019_v60 = vpop.f32.mrb[87].mxu0  ;;  %v1033_v52 = vadd.f32 %v1010_v62, %v4210_v38  ;;  %v2984_v43 = vpop.f32.mrb[85].mxu1 }
 0x1aa   : > { %v1013_v36 = vpop.f32.mrb[86].mxu1 }
 0x1ab   : > { %v1034_v5 = vadd.f32 %v1013_v36, %v4213_v6  ;;  %v2985_v2 = vpop.f32.mrb[87].mxu1 }
 0x1ae   : > { %v1215_v40 = vpop.f32.mrb[88].mxu0 }
 0x1af   : > { %v4266_v0 = vadd.f32 %v1215_v40, %v1033_v52  ;;  %v3022_v20 = vpop.f32.mrb[89].mxu0 }
 0x1b0   : > { %v1218_v48 = vpop.f32.mrb[90].mxu0  ;;  %v1326_v3 = vpop.f32.mrb[88].mxu1 }
 0x1b1   : > { %v4268_v21 = vadd.f32 %v1218_v48, %v1034_v5  ;;  %v3023_v58 = vpop.f32.mrb[91].mxu0  ;;  %v1397_v23 = vadd.f32 %v1326_v3, %v4218_v12  ;;  %v3028_v29 = vpop.f32.mrb[89].mxu1 }
 0x1b2   : > { %v1329_v41 = vpop.f32.mrb[90].mxu1 }
 0x1b3   : > { %v1398_v38 = vadd.f32 %v1329_v41, %v4220_v16  ;;  %v3029_v32 = vpop.f32.mrb[91].mxu1 }
 0x1b6   : > { %v1468_v25 = vpop.f32.mrb[92].mxu0 }
 0x1b7   : > { %v4272_v17 = vadd.f32 %v1468_v25, %v1397_v23  ;;  %v3066_v6 = vpop.f32.mrb[93].mxu0 }
 0x1b8   : > { %v1471_v47 = vpop.f32.mrb[94].mxu0  ;;  %v1334_v45 = vpop.f32.mrb[92].mxu1 }
 0x1b9   : > { %v4274_v1 = vadd.f32 %v1471_v47, %v1398_v38  ;;  %v3067_v57 = vpop.f32.mrb[95].mxu0  ;;  %v1399_v50 = vadd.f32 %v1334_v45, %v4224_v30  ;;  %v3032_v37 = vpop.f32.mrb[93].mxu1  ;;  %v1980_v38 = vlaneseq }
 0x1ba   : > { %v1337_v59 = vpop.f32.mrb[94].mxu1 }
 0x1bb   : > { %v1400_v12 = vadd.f32 %v1337_v59, %v4226_v34  ;;  %v3033_v31 = vpop.f32.mrb[95].mxu1 }
 0x1be   : > { %v1476_v13 = vpop.f32.mrb[96].mxu0 }
 0x1bf   : > { %v4278_v26 = vadd.f32 %v1476_v13, %v1399_v50  ;;  %v3070_v16 = vpop.f32.mrb[97].mxu0 }
 0x1c0   : > { %v1479_v46 = vpop.f32.mrb[98].mxu0  ;;  %v1342_v42 = vpop.f32.mrb[96].mxu1 }
 0x1c1   : > { %v4280_v54 = vadd.f32 %v1479_v46, %v1400_v12  ;;  %v3071_v63 = vpop.f32.mrb[99].mxu0  ;;  %v1401_v22 = vadd.f32 %v1342_v42, %v4230_v7  ;;  %v3036_v53 = vpop.f32.mrb[97].mxu1 }
 0x1c2   : > { %v1345_v55 = vpop.f32.mrb[98].mxu1 }
 0x1c3   : > { %v1402_v30 = vadd.f32 %v1345_v55, %v4232_v18  ;;  %v3037_v28 = vpop.f32.mrb[99].mxu1 }
 0x1c6   : > { %v1484_v15 = vpop.f32.mrb[100].mxu0 }
 0x1c7   : > { %v4284_v27 = vadd.f32 %v1484_v15, %v1401_v22  ;;  %v3074_v34 = vpop.f32.mrb[101].mxu0 }
 0x1c8   : > { %v1487_v11 = vpop.f32.mrb[102].mxu0  ;;  %v1350_v49 = vpop.f32.mrb[100].mxu1 }
 0x1c9   : > { %v4286_v61 = vadd.f32 %v1487_v11, %v1402_v30  ;;  %v3075_v35 = vpop.f32.mrb[103].mxu0  ;;  %v1403_v14 = vadd.f32 %v1350_v49, %v4236_v39  ;;  %v3040_v33 = vpop.f32.mrb[101].mxu1 }
 0x1ca   : > { %v1353_v60 = vpop.f32.mrb[102].mxu1 }
 0x1cb   : > { %v1404_v7 = vadd.f32 %v1353_v60, %v4238_v44  ;;  %v3041_v62 = vpop.f32.mrb[103].mxu1 }
 0x1ce   : > { %v1492_v52 = vpop.f32.mrb[104].mxu0 }
 0x1cf   : > { %v4290_v43 = vadd.f32 %v1492_v52, %v1403_v14  ;;  %v3078_v18 = vpop.f32.mrb[105].mxu0 }
 0x1d0   : > { %v1495_v36 = vpop.f32.mrb[106].mxu0  ;;  %v1358_v40 = vpop.f32.mrb[104].mxu1 }
 0x1d1   : > { %v4292_v5 = vadd.f32 %v1495_v36, %v1404_v7  ;;  %v3079_v2 = vpop.f32.mrb[107].mxu0  ;;  %v1405_v20 = vadd.f32 %v1358_v40, %v4242_v8  ;;  %v3044_v48 = vpop.f32.mrb[105].mxu1  ;;  %v4301_v8 = vshrl.u32 %v1980_v38, 7 }
 0x1d2   : > { %v1361_v58 = vpop.f32.mrb[106].mxu1 }
 0x1d3   : > { %v1406_v39 = vadd.f32 %v1361_v58, %v4244_v56  ;;  %v3045_v3 = vpop.f32.mrb[107].mxu1  ;;  %v4307_v13 = vmul.u32.u64.low 3817748708, %v4301_v8  ;;  %v4308_v16 = vmul.u32.u64.high 3817748708, %v4301_v8, %v4307_v13  ;;  %v1983_v22 = vadd.s32 16, %v4301_v8 }
 0x1d4   : > { %v1984_v55 = vadd.s32 24, %v4301_v8  ;;  %v4332_v36 = vadd.s32 32, %v4301_v8  ;;  %v4335_v40 = vadd.s32 40, %v4301_v8 }
 0x1d5   : > { %v4320_v49 = vmul.u32.u64.low 3817748708, %v1983_v22  ;;  %v4321_v14 = vmul.u32.u64.high 3817748708, %v1983_v22, %v4320_v49  ;;  %v2005_v52 = vshrl.u32 %v4308_v16, 4 }
 0x1d6   : > { %v1500_v23 = vpop.f32.mrb[108].mxu0  ;;  %v4325_v7 = vmul.u32.u64.low 3817748708, %v1984_v55  ;;  %v4326_v62 = vmul.u32.u64.high 3817748708, %v1984_v55, %v4325_v7 }
 0x1d7   : > { %v4296_v29 = vadd.f32 %v1500_v23, %v1405_v20  ;;  %v3082_v44 = vpop.f32.mrb[109].mxu0 }
 0x1d8   : > { %v1503_v41 = vpop.f32.mrb[110].mxu0  ;;  %v1366_v6 = vpop.f32.mrb[108].mxu1 }
 0x1d9   : > { %v4298_v32 = vadd.f32 %v1503_v41, %v1406_v39  ;;  %v3083_v25 = vpop.f32.mrb[111].mxu0  ;;  %v1407_v47 = vadd.f32 %v1366_v6, %v4248_v24  ;;  %v3048_v57 = vpop.f32.mrb[109].mxu1  ;;  %v1982_v24 = vadd.s32 8, %v4301_v8  ;;  %v2006_v39 = vmul.u32 18, %v2005_v52 }
 0x1da   : > { %v1369_v45 = vpop.f32.mrb[110].mxu1  ;;  %v4341_v41 = vmul.u32.u64.low 3817748708, %v4332_v36  ;;  %v4342_v38 = vmul.u32.u64.high 3817748708, %v4332_v36, %v4341_v41  ;;  %v2027_v6 = vshrl.u32 %v4321_v14, 4 }
 0x1db   : > { %v1408_v50 = vadd.f32 %v1369_v45, %v4250_v10  ;;  %v3049_v56 = vpop.f32.mrb[111].mxu1  ;;  %v4317_v34 = vmul.u32.u64.low 3817748708, %v1982_v24  ;;  %v4318_v11 = vmul.u32.u64.high 3817748708, %v1982_v24, %v4317_v34 }
 0x1dc   : > { %v4353_v56 = vsub.s32 %v4301_v8, %v2006_v39  ;;  %v2028_v16 = vmul.u32 18, %v2027_v6 }
 0x1dd   : > { %v2016_v44 = vshrl.u32 %v4318_v11, 4 }
 0x1de   : > { %v1508_v37 = vpop.f32.mrb[112].mxu0  ;;  %vm2197_vm10 = vcmp.ne.s32.totalorder %v4353_v56, 0  ;;  %vm2215_vm11 = vcmp.lt.s32.totalorder %v4353_v56, 0  ;;  %v4370_v49 = vsub.s32 %v1983_v22, %v2028_v16 }
 0x1df   : > { %v4304_v59 = vadd.f32 %v1508_v37, %v1407_v47  ;;  %v3086_v12 = vpop.f32.mrb[113].mxu0  ;;  %v4346_v47 = vmul.u32.u64.low 3817748708, %v4335_v40  ;;  %v4347_v57 = vmul.u32.u64.high 3817748708, %v4335_v40, %v4346_v47  ;;  %vm4383_vm12 = vmand %vm2215_vm11, %vm2197_vm10 }
 0x1e0   : > { %v1511_v31 = vpop.f32.mrb[114].mxu0  ;;  %v1374_v42 = vpop.f32.mrb[112].mxu1  ;;  %vm2199_vm15 = vcmp.ne.s32.totalorder %v4370_v49, 0  ;;  %vm2217_vm0 = vcmp.lt.s32.totalorder %v4370_v49, 0 }
 0x1e1   : > { %v4310_v46 = vadd.f32 %v1511_v31, %v1408_v50  ;;  %v3087_v63 = vpop.f32.mrb[115].mxu0  ;;  %v1409_v10 = vadd.f32 %v1374_v42, %v4254_v19  ;;  %v3052_v53 = vpop.f32.mrb[113].mxu1  ;;  %v2038_v50 = vshrl.u32 %v4326_v62, 4  ;;  %v2017_v31 = vmul.u32 18, %v2016_v44  ;;  %vm4425_vm5 = vmand %vm2217_vm0, %vm2199_vm15 }
 0x1e2   : > { %v1377_v30 = vpop.f32.mrb[114].mxu1  ;;  %v2060_v14 = vshrl.u32 %v4347_v57, 4  ;;  %v2251_v62 = vadd.s32 18, %v4353_v56  ;;  %v4577_v57 = vadd.s32 104, %v4301_v8 }
 0x1e3   : > { %v1410_v28 = vadd.f32 %v1377_v30, %v4256_v51  ;;  %v3053_v15 = vpop.f32.mrb[115].mxu1  ;;  %v4360_v30 = vadd.s32 48, %v4301_v8  ;;  %v4367_v11 = vsub.s32 %v1982_v24, %v2017_v31 }
 0x1e5   : > { %vm2198_vm13 = vcmp.ne.s32.totalorder %v4367_v11, 0  ;;  %vm2216_vm14 = vcmp.lt.s32.totalorder %v4367_v11, 0 }
 0x1e6   : > { %v1516_v35 = vpop.f32.mrb[116].mxu0  ;;  %vm4412_vm2 = vmand %vm2216_vm14, %vm2198_vm13 }
 0x1e7   : > { %v4323_v33 = vadd.f32 %v1516_v35, %v1409_v10  ;;  %v3090_v60 = vpop.f32.mrb[117].mxu0  ;;  %v2039_v10 = vmul.u32 18, %v2038_v50  ;;  %v2253_v50 = vadd.s32 18, %v4370_v49 }
 0x1e8   : > { %v1519_v19 = vpop.f32.mrb[118].mxu0  ;;  %v1382_v2 = vpop.f32.mrb[116].mxu1 }
 0x1e9   : > { %v4329_v18 = vadd.f32 %v1519_v19, %v1410_v28  ;;  %v3091_v51 = vpop.f32.mrb[119].mxu0  ;;  %v1411_v20 = vadd.f32 %v1382_v2, %v4260_v9  ;;  %v3056_v48 = vpop.f32.mrb[117].mxu1  ;;  %v4363_v28 = vadd.s32 56, %v4301_v8  ;;  %v4376_v19 = vsub.s32 %v1984_v55, %v2039_v10 }
 0x1ea   : > { %v1385_v58 = vpop.f32.mrb[118].mxu1  ;;  %v4388_v22 = vmul.u32.u64.low 3817748708, %v4360_v30  ;;  %v4389_v51 = vmul.u32.u64.high 3817748708, %v4360_v30, %v4388_v22 }
 0x1eb   : > { %v1412_v3 = vadd.f32 %v1385_v58, %v4262_v4  ;;  %v3057_v23 = vpop.f32.mrb[119].mxu1  ;;  %vm2200_vm3 = vcmp.ne.s32.totalorder %v4376_v19, 0  ;;  %vm2218_vm4 = vcmp.lt.s32.totalorder %v4376_v19, 0 }
 0x1ec   : > { %v4402_v23 = vadd.s32 72, %v4301_v8  ;;  %vm4453_vm7 = vmand %vm2218_vm4, %vm2200_vm3 }
 0x1ee   : > { %v1524_v25 = vpop.f32.mrb[120].mxu0 }
 0x1ef   : > { %v4349_v9 = vadd.f32 %v1524_v25, %v1411_v20  ;;  %v3094_v45 = vpop.f32.mrb[121].mxu0  ;;  %v4392_v2 = vmul.u32.u64.low 3817748708, %v4363_v28  ;;  %v4393_v20 = vmul.u32.u64.high 3817748708, %v4363_v28, %v4392_v2 }
 0x1f0   : > { %v1527_v4 = vpop.f32.mrb[122].mxu0  ;;  %v1390_v13 = vpop.f32.mrb[120].mxu1  ;;  %v2252_v45 = vadd.s32 18, %v4367_v11 }
 0x1f1   : > { %v4355_v37 = vadd.f32 %v1527_v4, %v1412_v3  ;;  %v3095_v12 = vpop.f32.mrb[123].mxu0  ;;  %v1413_v63 = vadd.f32 %v1390_v13, %v4266_v0  ;;  %v3060_v42 = vpop.f32.mrb[121].mxu1  ;;  %v2049_v0 = vshrl.u32 %v4342_v38, 4  ;;  %v2061_v3 = vmul.u32 18, %v2060_v14  ;;  %v4435_v13 = vld [vmem:[%s4927_s2] ss:$0 sm:$0xff] }
 0x1f2   : > { %v1393_v53 = vpop.f32.mrb[122].mxu1  ;;  %v2269_v38 = vsel %vm4383_vm12, %v2251_v62, %v4353_v56  ;;  %v2082_v14 = vshrl.u32 %v4393_v20, 4  ;;  %vm2324_vm12 = vcmask 64512  }
 0x1f3   : > { %v1414_v15 = vadd.f32 %v1393_v53, %v4268_v21  ;;  %v3061_v34 = vpop.f32.mrb[123].mxu1  ;;  %v4379_v21 = vadd.s32 64, %v4301_v8  ;;  %v2050_v58 = vmul.u32 18, %v2049_v0  ;;  %v4439_v16 = vsub.s32 %v4335_v40, %v2061_v3 }
 0x1f4   : > { %vm4445_vm6 = vcmp.lt.s32.totalorder %v2269_v38, 16  ;;  %v2270_v34 = vsel %vm4412_vm2, %v2252_v45, %v4367_v11  ;;  %v2271_v0 = vsel %vm4425_vm5, %v2253_v50, %v4370_v49  ;;  %v2083_v3 = vmul.u32 18, %v2082_v14 }
 0x1f5   : > { %v4409_v25 = vmul.u32.u64.low 3817748708, %v4379_v21  ;;  %v4410_v6 = vmul.u32.u64.high 3817748708, %v4379_v21, %v4409_v25  ;;  %v4430_v12 = vsub.s32 %v4332_v36, %v2050_v58  ;;  %vm2202_vm10 = vcmp.ne.s32.totalorder %v4439_v16, 0 }
 0x1f6   : > { %v1532_v35 = vpop.f32.mrb[124].mxu0  ;;  %vm2220_vm11 = vcmp.lt.s32.totalorder %v4439_v16, 0  ;;  %vm2288_vm13 = vcmp.lt.s32.totalorder %v2270_v34, 16  ;;  %v2256_v25 = vadd.s32 18, %v4439_v16  ;;  %vm4489_vm15 = vcmp.lt.s32.totalorder %v2271_v0, 16 }
 0x1f7   : > { %v4373_v60 = vadd.f32 %v1532_v35, %v1413_v63  ;;  %v3098_v7 = vpop.f32.mrb[125].mxu0  ;;  %v4442_v63 = vmul.u32.u64.low 3817748708, %v4402_v23  ;;  %v4443_v42 = vmul.u32.u64.high 3817748708, %v4402_v23, %v4442_v63  ;;  %v2071_v35 = vshrl.u32 %v4389_v51, 4  ;;  %vm4501_vm2 = vmand %vm2220_vm11, %vm2202_vm10 }
 0x1f8   : > { %v1535_v52 = vpop.f32.mrb[126].mxu0  ;;  %v1673_v39 = vpop.f32.mrb[124].mxu1  ;;  %vm2201_vm8 = vcmp.ne.s32.totalorder %v4430_v12, 0  ;;  %vm2219_vm9 = vcmp.lt.s32.totalorder %v4430_v12, 0  ;;  %v2255_v22 = vadd.s32 18, %v4430_v12  ;;  %v4507_v50 = vadd.s32 80, %v4301_v8 }
 0x1f9   : > { %v4395_v55 = vadd.f32 %v1535_v52, %v1414_v15  ;;  %v3099_v48 = vpop.f32.mrb[127].mxu0  ;;  %v1744_v44 = vadd.f32 %v1673_v39, %v4272_v17  ;;  %v3104_v41 = vpop.f32.mrb[125].mxu1  ;;  %vm4481_vm14 = vmand %vm2219_vm9, %vm2201_vm8  ;;  %v2072_v39 = vmul.u32 18, %v2071_v35 }
 0x1fa   : > { %v1676_v47 = vpop.f32.mrb[126].mxu1  ;;  %v2093_v48 = vshrl.u32 %v4410_v6, 4 }
 0x1fb   : > { %v1745_v17 = vadd.f32 %v1676_v47, %v4274_v1  ;;  %v3105_v4 = vpop.f32.mrb[127].mxu1  ;;  %v2254_v1 = vadd.s32 18, %v4376_v19  ;;  %v4574_v47 = vadd.s32 96, %v4301_v8 }
 0x1fd   : > { %v2272_v11 = vsel %vm4453_vm7, %v2254_v1, %v4376_v19  ;;  %v2094_v1 = vmul.u32 18, %v2093_v48 }
 0x1fe   : > { %v1848_v31 = vpop.f32.mrb[128].mxu0  ;;  %vm4493_vm0 = vcmp.lt.s32.totalorder %v2272_v11, 16 }
 0x1ff   : > { %v1919_v10 = vadd.f32 %v1848_v31, %v1744_v44  ;;  %v3142_v36 = vpop.f32.mrb[129].mxu0  ;;  %v2273_v31 = vsel %vm4481_vm14, %v2255_v22, %v4430_v12  ;;  %v2274_v12 = vsel %vm4501_vm2, %v2256_v25, %v4439_v16  ;;  %v4538_v16 = vsub.s32 %v4379_v21, %v2094_v1 }
 0x200   : > { %v1851_v40 = vpop.f32.mrb[130].mxu0  ;;  %v1681_v24 = vpop.f32.mrb[128].mxu1  ;;  %v4515_v36 = vsub.s32 %v4360_v30, %v2072_v39  ;;  %vm4524_vm3 = vcmp.lt.s32.totalorder %v2273_v31, 16  ;;  %vm4540_vm4 = vcmp.lt.s32.totalorder %v2274_v12, 16 }
 0x201   : > { %v1944_v7 = vadd.f32 %v4435_v13, %v1919_v10  ;;  %v1920_v62 = vadd.f32 %v1851_v40, %v1745_v17  ;;  %v3143_v52 = vpop.f32.mrb[131].mxu0  ;;  %v1746_v49 = vadd.f32 %v1681_v24, %v4278_v26  ;;  %v3108_v2 = vpop.f32.mrb[129].mxu1  ;;  %vm2205_vm10 = vcmp.ne.s32.totalorder %v4538_v16, 0 }
 0x202   : > { %v1684_v58 = vpop.f32.mrb[130].mxu1  ;;  %vm2203_vm5 = vcmp.ne.s32.totalorder %v4515_v36, 0  ;;  %v2257_v2 = vadd.s32 18, %v4515_v36  ;;  %vm2223_vm11 = vcmp.lt.s32.totalorder %v4538_v16, 0 }
 0x203   : > { %v1962_v51 = vmax.f32 %v1944_v7, 0.0  ;;  %v1945_v20 = vadd.f32 %v4435_v13, %v1920_v62  ;;  %v1747_v44 = vadd.f32 %v1684_v58, %v4280_v54  ;;  %v3109_v38 = vpop.f32.mrb[131].mxu1  ;;  %v2104_v54 = vshrl.u32 %v4443_v42, 4 }
 0x204   : > { %v4518_v42 = vsub.s32 %v4363_v28, %v2083_v3  ;;  %v4529_v30 = vmul.u32.u64.low 3817748708, %v4507_v50  ;;  %v4530_v62 = vmul.u32.u64.high 3817748708, %v4507_v50, %v4529_v30  ;;  %v4533_v28 = vadd.s32 88, %v4301_v8 }
 0x205   : > { %v2305_v26 = vsel %vm4445_vm6, %v1962_v51, 0.0  ;;  %v1963_v41 = vmax.f32 %v1945_v20, 0.0  ;;  %v2105_v7 = vmul.u32 18, %v2104_v54  ;;  %vm2221_vm6 = vcmp.lt.s32.totalorder %v4515_v36, 0 }
 0x206   : > { %v1856_v6 = vpop.f32.mrb[132].mxu0  ;;  %v2325_v63 = vsel %vm2324_vm12, %v2305_v26, 0.0  ;;  %vm2204_vm7 = vcmp.ne.s32.totalorder %v4518_v42, 0  ;;  %vm2222_vm8 = vcmp.lt.s32.totalorder %v4518_v42, 0  ;;  %vm4566_vm9 = vmand %vm2221_vm6, %vm2203_vm5 }
 0x207   : > { %v2306_v17 = vsel %vm2288_vm13, %v1963_v41, 0.0  ;;  %v1921_v4 = vadd.f32 %v1856_v6, %v1746_v49  ;;  %v3146_v56 = vpop.f32.mrb[133].mxu0  ;;  %v4554_v39 = vsub.s32 %v4402_v23, %v2105_v7  ;;  %v2275_v1 = vsel %vm4566_vm9, %v2257_v2, %v4515_v36  ;;  %vm4588_vm13 = vmand %vm2222_vm8, %vm2204_vm7 }
 0x208   : > { %v2326_v10 = vsel %vm2324_vm12, %v2306_v17, 0.0  ;;  %v1859_v53 = vpop.f32.mrb[134].mxu0  ;;  %v1689_v35 = vpop.f32.mrb[132].mxu1  ;;  %v4557_v3 = vmul.u32.u64.low 3817748708, %v4533_v28  ;;  %v4558_v26 = vmul.u32.u64.high 3817748708, %v4533_v28, %v4557_v3  ;;  %v2258_v56 = vadd.s32 18, %v4518_v42 }
 0x209   : > { %v2327_v15 = vadd.f32 %v2326_v10, %v2325_v63  ;;  %v1946_v40 = vadd.f32 %v4435_v13, %v1921_v4  ;;  %v1922_v34 = vadd.f32 %v1859_v53, %v1747_v44  ;;  %v3147_v0 = vpop.f32.mrb[135].mxu0  ;;  %v1748_v52 = vadd.f32 %v1689_v35, %v4284_v27  ;;  %v3112_v11 = vpop.f32.mrb[133].mxu1 }
 0x20a   : > { %v1692_v49 = vpop.f32.mrb[134].mxu1  ;;  %v2259_v10 = vadd.s32 18, %v4538_v16  ;;  %vm2206_vm14 = vcmp.ne.s32.totalorder %v4554_v39, 0  ;;  %v2115_v0 = vshrl.u32 %v4530_v62, 4  ;;  %v2126_v14 = vshrl.u32 %v4558_v26, 4 }
 0x20b   : > { %v1964_v24 = vmax.f32 %v1946_v40, 0.0  ;;  %v1947_v22 = vadd.f32 %v4435_v13, %v1922_v34  ;;  %v1749_v20 = vadd.f32 %v1692_v49, %v4286_v61  ;;  %v3113_v48 = vpop.f32.mrb[135].mxu1  ;;  %v2260_v49 = vadd.s32 18, %v4554_v39 }
 0x20c   : > { %v4607_v35 = vmul.u32.u64.low 3817748708, %v4574_v47  ;;  %v4608_v7 = vmul.u32.u64.high 3817748708, %v4574_v47, %v4607_v35 }
 0x20d   : > { %v2307_v27 = vsel %vm4489_vm15, %v1964_v24, 0.0  ;;  %v1965_v21 = vmax.f32 %v1947_v22, 0.0  ;;  %vm2224_vm15 = vcmp.lt.s32.totalorder %v4554_v39, 0 }
 0x20e   : > { %v2328_v58 = vsel %vm2324_vm12, %v2307_v27, 0.0  ;;  %v1864_v19 = vpop.f32.mrb[136].mxu0  ;;  %v2276_v27 = vsel %vm4588_vm13, %v2258_v56, %v4518_v42  ;;  %vm4629_vm2 = vmand %vm2224_vm15, %vm2206_vm14 }
 0x20f   : > { %v2329_v44 = vadd.f32 %v2328_v58, %v2327_v15  ;;  %v2308_v41 = vsel %vm4493_vm0, %v1965_v21, 0.0  ;;  %v1923_v38 = vadd.f32 %v1864_v19, %v1748_v52  ;;  %v3150_v61 = vpop.f32.mrb[137].mxu0  ;;  %vm4601_vm0 = vmand %vm2223_vm11, %vm2205_vm10  ;;  %v2116_v19 = vmul.u32 18, %v2115_v0 }
 0x210   : > { %v2330_v23 = vsel %vm2324_vm12, %v2308_v41, 0.0  ;;  %v1867_v6 = vpop.f32.mrb[138].mxu0  ;;  %v1697_v31 = vpop.f32.mrb[136].mxu1  ;;  %v4642_v41 = vadd.s32 112, %v4301_v8  ;;  %v2278_v51 = vsel %vm4629_vm2, %v2260_v49, %v4554_v39 }
 0x211   : > { %v2331_v45 = vadd.f32 %v2330_v23, %v2329_v44  ;;  %v1948_v54 = vadd.f32 %v4435_v13, %v1923_v38  ;;  %v1924_v17 = vadd.f32 %v1867_v6, %v1749_v20  ;;  %v3151_v4 = vpop.f32.mrb[139].mxu0  ;;  %v1750_v53 = vadd.f32 %v1697_v31, %v4290_v43  ;;  %v3116_v40 = vpop.f32.mrb[137].mxu1 }
 0x212   : > { %v1700_v12 = vpop.f32.mrb[138].mxu1  ;;  %v4611_v43 = vmul.u32.u64.low 3817748708, %v4577_v57  ;;  %v4612_v30 = vmul.u32.u64.high 3817748708, %v4577_v57, %v4611_v43  ;;  %v2277_v20 = vsel %vm4601_vm0, %v2259_v10, %v4538_v16  ;;  %v4662_v39 = vsub.s32 %v4507_v50, %v2116_v19 }
 0x213   : > { %v1966_v15 = vmax.f32 %v1948_v54, 0.0  ;;  %v1949_v36 = vadd.f32 %v4435_v13, %v1924_v17  ;;  %v1751_v24 = vadd.f32 %v1700_v12, %v4292_v5  ;;  %v3117_v22 = vpop.f32.mrb[139].mxu1  ;;  %vm4652_vm5 = vcmp.lt.s32.totalorder %v2277_v20, 16 }
 0x214   : > { %v2127_v54 = vmul.u32 18, %v2126_v14  ;;  %v4657_v17 = vadd.s32 120, %v4301_v8  ;;  %vm4664_vm6 = vcmp.lt.s32.totalorder %v2278_v51, 16  ;;  %v2148_v50 = vshrl.u32 %v4612_v30, 4 }
 0x215   : > { %v2309_v52 = vsel %vm4524_vm3, %v1966_v15, 0.0  ;;  %v1967_v11 = vmax.f32 %v1949_v36, 0.0  ;;  %vm4637_vm3 = vcmp.lt.s32.totalorder %v2275_v1, 16  ;;  %vm2207_vm7 = vcmp.ne.s32.totalorder %v4662_v39, 0 }
 0x216   : > { %v2332_v62 = vsel %vm2324_vm12, %v2309_v52, 0.0  ;;  %v1872_v2 = vpop.f32.mrb[140].mxu0  ;;  %v4670_v15 = vmul.u32.u64.low 3817748708, %v4642_v41  ;;  %v4671_v40 = vmul.u32.u64.high 3817748708, %v4642_v41, %v4670_v15  ;;  %v4679_v43 = vsub.s32 %v4533_v28, %v2127_v54 }
 0x217   : > { %v2333_v21 = vadd.f32 %v2332_v62, %v2331_v45  ;;  %v2310_v48 = vsel %vm4540_vm4, %v1967_v11, 0.0  ;;  %v1925_v58 = vadd.f32 %v1872_v2, %v1750_v53  ;;  %v3154_v42 = vpop.f32.mrb[141].mxu0  ;;  %vm4648_vm4 = vcmp.lt.s32.totalorder %v2276_v27, 16 }
 0x218   : > { %v2334_v3 = vsel %vm2324_vm12, %v2310_v48, 0.0  ;;  %v1875_v44 = vpop.f32.mrb[142].mxu0  ;;  %v1705_v23 = vpop.f32.mrb[140].mxu1  ;;  %v2137_v53 = vshrl.u32 %v4608_v7, 4  ;;  %v4682_v7 = vmul.u32.u64.low 3817748708, %v4657_v17  ;;  %v4683_v52 = vmul.u32.u64.high 3817748708, %v4657_v17, %v4682_v7 }
 0x219   : > { %v2335_v38 = vadd.f32 %v2334_v3, %v2333_v21  ;;  %v1950_v26 = vadd.f32 %v4435_v13, %v1925_v58  ;;  %v1926_v61 = vadd.f32 %v1875_v44, %v1751_v24  ;;  %v3155_v25 = vpop.f32.mrb[143].mxu0  ;;  %v1752_v4 = vadd.f32 %v1705_v23, %v4296_v29  ;;  %v3120_v31 = vpop.f32.mrb[141].mxu1 }
 0x21a   : > { %v1708_v63 = vpop.f32.mrb[142].mxu1  ;;  %vm2225_vm8 = vcmp.lt.s32.totalorder %v4662_v39, 0  ;;  %v2138_v62 = vmul.u32 18, %v2137_v53  ;;  %v4691_v28 = vadd.s32 128, %v4301_v8  ;;  %v2149_v14 = vmul.u32 18, %v2148_v50 }
 0x21b   : > { %v1968_v56 = vmax.f32 %v1950_v26, 0.0  ;;  %v1951_v1 = vadd.f32 %v4435_v13, %v1926_v61  ;;  %v1753_v36 = vadd.f32 %v1708_v63, %v4298_v32  ;;  %v3121_v0 = vpop.f32.mrb[143].mxu1  ;;  %v2261_v48 = vadd.s32 18, %v4662_v39  ;;  %vm4707_vm11 = vmand %vm2225_vm8, %vm2207_vm7 }
 0x21c   : > { %vm2208_vm9 = vcmp.ne.s32.totalorder %v4679_v43, 0  ;;  %vm2226_vm10 = vcmp.lt.s32.totalorder %v4679_v43, 0  ;;  %v4698_v58 = vadd.s32 136, %v4301_v8  ;;  %v2262_v44 = vadd.s32 18, %v4679_v43 }
 0x21d   : > { %v2311_v29 = vsel %vm4637_vm3, %v1968_v56, 0.0  ;;  %v1969_v34 = vmax.f32 %v1951_v1, 0.0  ;;  %v4712_v8 = vsub.s32 %v4574_v47, %v2138_v62  ;;  %vm4726_vm13 = vmand %vm2226_vm10, %vm2208_vm9  ;;  %v2170_v45 = vshrl.u32 %v4683_v52, 4 }
 0x21e   : > { %v2336_v12 = vsel %vm2324_vm12, %v2311_v29, 0.0  ;;  %v1880_v35 = vpop.f32.mrb[144].mxu0  ;;  %v4716_v61 = vmul.u32.u64.low 3817748708, %v4691_v28  ;;  %v4717_v25 = vmul.u32.u64.high 3817748708, %v4691_v28, %v4716_v61 }
 0x21f   : > { %v2337_v24 = vadd.f32 %v2336_v12, %v2335_v38  ;;  %v2312_v11 = vsel %vm4648_vm4, %v1969_v34, 0.0  ;;  %v1927_v22 = vadd.f32 %v1880_v35, %v1752_v4  ;;  %v3158_v32 = vpop.f32.mrb[145].mxu0  ;;  %v4731_v4 = vsub.s32 %v4577_v57, %v2149_v14 }
 0x220   : > { %v2338_v30 = vsel %vm2324_vm12, %v2312_v11, 0.0  ;;  %v1883_v49 = vpop.f32.mrb[146].mxu0  ;;  %v1713_v21 = vpop.f32.mrb[144].mxu1  ;;  %v2280_v34 = vsel %vm4726_vm13, %v2262_v44, %v4679_v43  ;;  %vm2209_vm14 = vcmp.ne.s32.totalorder %v4712_v8, 0  ;;  %vm2227_vm15 = vcmp.lt.s32.totalorder %v4712_v8, 0 }
 0x221   : > { %v2339_v2 = vadd.f32 %v2338_v30, %v2337_v24  ;;  %v1952_v27 = vadd.f32 %v4435_v13, %v1927_v22  ;;  %v1928_v20 = vadd.f32 %v1883_v49, %v1753_v36  ;;  %v3159_v5 = vpop.f32.mrb[147].mxu0  ;;  %v1754_v42 = vadd.f32 %v1713_v21, %v4304_v59  ;;  %v3124_v3 = vpop.f32.mrb[145].mxu1 }
 0x222   : > { %v1716_v38 = vpop.f32.mrb[146].mxu1  ;;  %v2159_v59 = vshrl.u32 %v4671_v40, 4  ;;  %v2279_v40 = vsel %vm4707_vm11, %v2261_v48, %v4662_v39  ;;  %vm2210_vm2 = vcmp.ne.s32.totalorder %v4731_v4, 0  ;;  %vm2228_vm3 = vcmp.lt.s32.totalorder %v4731_v4, 0 }
 0x223   : > { %v1970_v19 = vmax.f32 %v1952_v27, 0.0  ;;  %v1953_v16 = vadd.f32 %v4435_v13, %v1928_v20  ;;  %v1755_v23 = vadd.f32 %v1716_v38, %v4310_v46  ;;  %v3125_v54 = vpop.f32.mrb[147].mxu1  ;;  %vm4751_vm0 = vcmp.lt.s32.totalorder %v2279_v40, 16 }
 0x224   : > { %v4736_v46 = vmul.u32.u64.low 3817748708, %v4698_v58  ;;  %v4737_v1 = vmul.u32.u64.high 3817748708, %v4698_v58, %v4736_v46  ;;  %v2160_v0 = vmul.u32 18, %v2159_v59  ;;  %v2263_v32 = vadd.s32 18, %v4712_v8 }
 0x225   : > { %v2313_v51 = vsel %vm4652_vm5, %v1970_v19, 0.0  ;;  %v1971_v6 = vmax.f32 %v1953_v16, 0.0  ;;  %v2171_v43 = vmul.u32 18, %v2170_v45  ;;  %vm2298_vm4 = vcmp.lt.s32.totalorder %v2280_v34, 16  ;;  %vm4762_vm5 = vmand %vm2227_vm15, %vm2209_vm14 }
 0x226   : > { %v2340_v56 = vsel %vm2324_vm12, %v2313_v51, 0.0  ;;  %v1888_v31 = vpop.f32.mrb[148].mxu0  ;;  %v2264_v62 = vadd.s32 18, %v4731_v4  ;;  %v2192_v19 = vshrl.u32 %v4737_v1, 4  ;;  %v2281_v44 = vsel %vm4762_vm5, %v2263_v32, %v4712_v8 }
 0x227   : > { %v2341_v63 = vadd.f32 %v2340_v56, %v2339_v2  ;;  %v2314_v53 = vsel %vm4664_vm6, %v1971_v6, 0.0  ;;  %v1929_v15 = vadd.f32 %v1888_v31, %v1754_v42  ;;  %v3162_v57 = vpop.f32.mrb[149].mxu0  ;;  %v4768_v2 = vsub.s32 %v4642_v41, %v2160_v0  ;;  %vm4778_vm6 = vmand %vm2228_vm3, %vm2210_vm2 }
 0x228   : > { %v2342_v29 = vsel %vm2324_vm12, %v2314_v53, 0.0  ;;  %v1891_v36 = vpop.f32.mrb[150].mxu0  ;;  %v1721_v7 = vpop.f32.mrb[148].mxu1  ;;  %v4784_v42 = vsub.s32 %v4657_v17, %v2171_v43  ;;  %v2282_v61 = vsel %vm4778_vm6, %v2264_v62, %v4731_v4  ;;  %vm2299_vm9 = vcmp.lt.s32.totalorder %v2281_v44, 16 }
 0x229   : > { %v2343_v50 = vadd.f32 %v2342_v29, %v2341_v63  ;;  %v1954_v10 = vadd.f32 %v4435_v13, %v1929_v15  ;;  %v1930_v12 = vadd.f32 %v1891_v36, %v1755_v23  ;;  %v3163_v35 = vpop.f32.mrb[151].mxu0  ;;  %v1756_v52 = vadd.f32 %v1721_v7, %v4323_v33  ;;  %v3128_v11 = vpop.f32.mrb[149].mxu1 }
 0x22a   : > { %v1724_v30 = vpop.f32.mrb[150].mxu1  ;;  %v2181_v33 = vshrl.u32 %v4717_v25, 4  ;;  %vm2211_vm7 = vcmp.ne.s32.totalorder %v4768_v2, 0  ;;  %vm2229_vm8 = vcmp.lt.s32.totalorder %v4768_v2, 0  ;;  %vm2212_vm10 = vcmp.ne.s32.totalorder %v4784_v42, 0 }
 0x22b   : > { %v1972_v24 = vmax.f32 %v1954_v10, 0.0  ;;  %v1955_v22 = vadd.f32 %v4435_v13, %v1930_v12  ;;  %v1757_v20 = vadd.f32 %v1724_v30, %v4329_v18  ;;  %v3129_v14 = vpop.f32.mrb[151].mxu1  ;;  %vm2230_vm11 = vcmp.lt.s32.totalorder %v4784_v42, 0  ;;  %vm4804_vm14 = vmand %vm2229_vm8, %vm2211_vm7 }
 0x22c   : > { %v2182_v17 = vmul.u32 18, %v2181_v33  ;;  %v2193_v8 = vmul.u32 18, %v2192_v19  ;;  %v2265_v45 = vadd.s32 18, %v4768_v2  ;;  %vm2300_vm13 = vcmp.lt.s32.totalorder %v2282_v61, 16  ;;  %vm4815_vm15 = vmand %vm2230_vm11, %vm2212_vm10 }
 0x22d   : > { %v2315_v27 = vsel %vm4751_vm0, %v1972_v24, 0.0  ;;  %v1973_v5 = vmax.f32 %v1955_v22, 0.0  ;;  %v2266_v63 = vadd.s32 18, %v4784_v42  ;;  %vm2367_vm11 = vcmask 57344  }
 0x22e   : > { %v2344_v41 = vsel %vm2324_vm12, %v2315_v27, 0.0  ;;  %v1896_v48 = vpop.f32.mrb[152].mxu0  ;;  %v2183_v53 = vsub.s32 %v4691_v28, %v2182_v17  ;;  %v2194_v0 = vsub.s32 %v4698_v58, %v2193_v8 }
 0x22f   : > { %v2345_v3 = vadd.f32 %v2344_v41, %v2343_v50  ;;  %v2316_v18 = vsel %vm2298_vm4, %v1973_v5, 0.0  ;;  %v1931_v16 = vadd.f32 %v1896_v48, %v1756_v52  ;;  %v3166_v38 = vpop.f32.mrb[153].mxu0  ;;  %v2284_v39 = vsel %vm4815_vm15, %v2266_v63, %v4784_v42 }
 0x230   : > { %v2346_v26 = vsel %vm2324_vm12, %v2316_v18, 0.0  ;;  %v1899_v59 = vpop.f32.mrb[154].mxu0  ;;  %v1729_v54 = vpop.f32.mrb[152].mxu1  ;;  %vm2213_vm0 = vcmp.ne.s32.totalorder %v2183_v53, 0  ;;  %vm2231_vm2 = vcmp.lt.s32.totalorder %v2183_v53, 0  ;;  %v2267_v22 = vadd.s32 18, %v2183_v53 }
 0x231   : > { %v2347_v25 = vadd.f32 %v2346_v26, %v2345_v3  ;;  %v1956_v51 = vadd.f32 %v4435_v13, %v1931_v16  ;;  %v1932_v23 = vadd.f32 %v1899_v59, %v1757_v20  ;;  %v3167_v6 = vpop.f32.mrb[155].mxu0  ;;  %v1758_v47 = vadd.f32 %v1729_v54, %v4349_v9  ;;  %v3132_v56 = vpop.f32.mrb[153].mxu1  ;;  %vm4832_vm7 = vmand %vm2231_vm2, %vm2213_vm0 }
 0x232   : > { %v1732_v46 = vpop.f32.mrb[154].mxu1  ;;  %vm2214_vm4 = vcmp.ne.s32.totalorder %v2194_v0, 0  ;;  %vm2232_vm5 = vcmp.lt.s32.totalorder %v2194_v0, 0  ;;  %vm2302_vm6 = vcmp.lt.s32.totalorder %v2284_v39, 16  ;;  %v2268_v21 = vadd.s32 18, %v2194_v0 }
 0x233   : > { %v1974_v4 = vmax.f32 %v1956_v51, 0.0  ;;  %v1957_v31 = vadd.f32 %v4435_v13, %v1932_v23  ;;  %v1759_v9 = vadd.f32 %v1732_v46, %v4355_v37  ;;  %v3133_v57 = vpop.f32.mrb[155].mxu1  ;;  %v2283_v37 = vsel %vm4804_vm14, %v2265_v45, %v4768_v2  ;;  %vm4839_vm8 = vmand %vm2232_vm5, %vm2214_vm4 }
 0x234   : > { %vm2301_vm3 = vcmp.lt.s32.totalorder %v2283_v37, 16  ;;  %v2285_v18 = vsel %vm4832_vm7, %v2267_v22, %v2183_v53  ;;  %v2286_v61 = vsel %vm4839_vm8, %v2268_v21, %v2194_v0  ;;  %v2323_v53 = vld [vmem:[#allocation2] sm:$0x1]  ;;  %v3423_v57 = vmov (!%p2732_p1), 0.0  }
 0x235   : > { %v2317_v15 = vsel %vm2299_vm9, %v1974_v4, 0.0  ;;  %v1975_v40 = vmax.f32 %v1957_v31, 0.0  ;;  %vm2303_vm9 = vcmp.lt.s32.totalorder %v2285_v18, 16  ;;  %vm2304_vm10 = vcmp.lt.s32.totalorder %v2286_v61, 16  ;;  %3176 = vmatprep.subr.mxu0 (!%p2732_p1), %v3423_v57 }
 0x236   : > { %v2348_v36 = vsel %vm2324_vm12, %v2317_v15, 0.0  ;;  %v1904_v34 = vpop.f32.mrb[156].mxu0  ;;  %vm3426_vm14 = vmmov (!%p2732_p1), 1   ;;  %vm2531_vm0 = vcmask (!%p2732_p1), 8192  }
 0x237   : > { %v2349_v50 = vadd.f32 %v2348_v36, %v2347_v25  ;;  %v2318_v28 = vsel %vm2300_vm13, %v1975_v40, 0.0  ;;  %v1933_v10 = vadd.f32 %v1904_v34, %v1758_v47  ;;  %v3170_v12 = vpop.f32.mrb[157].mxu0  ;;  %vm3424_vm13 = vmmov (!%p2732_p1), 0   ;;  %v2451_v36 = vld [vmem:[%s4930_s5] sm:$0xff] (!%p2732_p1)  ;;  %v2452_v34 = vld [vmem:[%s4930_s5 + $0x8] sm:$0x3] (!%p2732_p1)  ;;  %vm3190_vm15 = vmpackc.low (!%p2732_p1), %vm473_vm1, %vm3426_vm14 }
 0x238   : > { %v2350_v35 = vsel %vm2324_vm12, %v2318_v28, 0.0  ;;  %v1907_v7 = vpop.f32.mrb[158].mxu0  ;;  %v1737_v11 = vpop.f32.mrb[156].mxu1  ;;  %3178 = vmatprep.mubr.msk.f32.mxu0 (!%p2732_p1), %vm3424_vm13, %v3423_v57  ;;  %3185 = vmatprep.mubr.msk.f32.mxu1 (!%p2732_p1), %vm3424_vm13, %v3423_v57  ;;  %v3189_v0 = vpack.c.bf16 (!%p2732_p1), %v2452_v34, %v2451_v36  ;;  %v2376_v28 = vld [vmem:[%s4929_s4] sm:$0x1] (!%p2732_p1) }
 0x239   : > { %v2351_v43 = vadd.f32 %v2350_v35, %v2349_v50  ;;  %v1958_v52 = vadd.f32 %v4435_v13, %v1933_v10  ;;  %v1934_v58 = vadd.f32 %v1907_v7, %v1759_v9  ;;  %v3171_v24 = vpop.f32.mrb[159].mxu0  ;;  %v1760_v32 = vadd.f32 %v1737_v11, %v4373_v60  ;;  %v3136_v49 = vpop.f32.mrb[157].mxu1  ;;  %v2453_v7 = vld [vmem:[%s4931_s6] sm:$0x1] (!%p2732_p1) }
 0x23a   : > { %v1740_v2 = vpop.f32.mrb[158].mxu1  ;;  %v3425_v50 = vmov (!%p2732_p1), 0.0|0.0  }
 0x23b   : > { %v1976_v30 = vmax.f32 %v1958_v52, 0.0  ;;  %v1959_v62 = vadd.f32 %v4435_v13, %v1934_v58  ;;  %v1761_v20 = vadd.f32 %v1740_v2, %v4395_v55  ;;  %v3137_v14 = vpop.f32.mrb[159].mxu1  ;;  %3188 = vmatprep.subr.bf16.mxu1 (!%p2732_p1), %v3425_v50 }
 0x23c   : > { %3191 = vmatpush3.bf16.msk.msra.mxu1 (!%p2732_p1), %vm3190_vm15, %v3189_v0 }
 0x23d   : > { %v2319_v27 = vsel %vm2301_vm3, %v1976_v30, 0.0  ;;  %v1977_v5 = vmax.f32 %v1959_v62, 0.0 }
 0x23e   : > { %v2352_v60 = vsel %vm2324_vm12, %v2319_v27, 0.0  ;;  %v1912_v41 = vpop.f32.mrb[160].mxu0 }
 0x23f   : > { %v2353_v42 = vadd.f32 %v2352_v60, %v2351_v43  ;;  %v2320_v19 = vsel %vm2302_vm6, %v1977_v5, 0.0  ;;  %v1935_v3 = vadd.f32 %v1912_v41, %v1760_v32  ;;  %v3174_v16 = vpop.f32.mrb[161].mxu0 }
 0x240   : > { %v2354_v55 = vsel %vm2324_vm12, %v2320_v19, 0.0  ;;  %v1915_v44 = vpop.f32.mrb[162].mxu0 }
 0x241   : > { %v2355_v38 = vadd.f32 %v2354_v55, %v2353_v42  ;;  %v1960_v26 = vadd.f32 %v4435_v13, %v1935_v3  ;;  %v1936_v59 = vadd.f32 %v1915_v44, %v1761_v20  ;;  %v3175_v17 = vpop.f32.mrb[163].mxu0 }
 0x243   : > { %v1978_v25 = vmax.f32 %v1960_v26, 0.0  ;;  %v1961_v51 = vadd.f32 %v4435_v13, %v1936_v59  ;;  %v2375_v13 = vld [vmem:[%s4928_s3] sm:$0xff] (!%p2732_p1) }
 0x244   : > { %3177 = vmatpush3.msra.mxu0 (!%p2732_p1), %v2375_v13 }
 0x245   : > { %v2321_v23 = vsel %vm2303_vm9, %v1978_v25, 0.0  ;;  %v1979_v6 = vmax.f32 %v1961_v51, 0.0 }
 0x246   : > { %v2356_v54 = vsel %vm2324_vm12, %v2321_v23, 0.0 }
 0x247   : > { %v2357_v8 = vadd.f32 %v2356_v54, %v2355_v38  ;;  %v2322_v47 = vsel %vm2304_vm10, %v1979_v6, 0.0 }
 0x248   : > { %v2358_v4 = vsel %vm2324_vm12, %v2322_v47, 0.0 }
 0x249   : > { %v2359_v56 = vadd.f32 %v2358_v4, %v2357_v8 }
 0x24b   : > { %v2360_v31 = vrot.slane %v2359_v56, 4 }
 0x24d   : > { %v2361_v45 = vadd.f32 %v2360_v31, %v2359_v56 }
 0x24f   : > { %v2362_v46 = vrot.slane %v2361_v45, 2 }
 0x251   : > { %v2363_v1 = vadd.f32 %v2362_v46, %v2361_v45 }
 0x253   : > { %v2364_v63 = vrot.slane %v2363_v1, 1  ;;  %2372 = sbr.rel (%p2732_p1) target bundleno = 1042 (0x412), region = 56 }
 0x255   : > { %v2365_v15 = vadd.f32 %v2364_v63, %v2363_v1 }
 0x257   : > { %v2366_v9 = vadd.f32 %v2365_v15, %v2323_v53 }
 0x259   : > { %2368 = vst.msk [vmem:[#allocation2] sm:$0x1] %vm2367_vm11, %v2366_v9 }
 0x260   : > { %v2373_v40 = vld [vmem:[#allocation2] sm:$0x1] }
 0x261   : > { %v2374_v29 = vmul.f32 0.00390625, %v2373_v40 }
 0x263   : > { %3179 = vmatmul.mubr.msk.f32.vlgmr.msra.gmra.mrb[0].mxu0 %vm2324_vm12, %v2374_v29  ;;  %vm2454_vm12 = vcmask 80896  }
 0x336   : > { %v2446_v10 = vpop.f32.mrb[0].mxu0 }
 0x337   : > { %v2447_v37 = vadd.f32 %v2446_v10, %v2376_v28  ;;  %v3180_v12 = vpop.f32.mrb[1].mxu0 }
 0x339   : > { %v2450_v35 = vmax.f32 %v2447_v37, 0.0 }
 0x33b   : > { %3186 = vmatmul.mubr.msk.f32.vlgmr.msra.gmra.mrb[0].mxu1 %vm2454_vm12, %v2450_v35 }
 0x40e   : > { %v2527_v39 = vpop.f32.mrb[0].mxu1 }
 0x40f   : > { %v2528_v43 = vadd.f32 %v2527_v39, %v2453_v7  ;;  %v3187_v52 = vpop.f32.mrb[1].mxu1 }
 0x411   : > { %2532 = vst.msk [vmem:[%s3549_s12] sm:$0x1] %vm2531_vm0, %v2528_v43 }
 0x412 PF: > { %s2736_s15 = sshll.u32 %s3406_s28, 4  ;;  %s2546_s21 = sshll.u32 %s3549_s12, 4  ;;  %s2547_s21 = int_to_ptr.vmem [resolvable:$true] %s2546_s21 }
 0x413   : > { %s4875_s20 = scalar_lea.hbm %s4932_s7, %s2736_s15  ;;  %s2534_s27 = scalar_lea.sflag [#allocation4], %s291_s18 }
 0x414   : > { %s3324_s22 = scalar_lea.vmem %s2547_s21, 16  ;;  %s3427_s23 = smov [#allocation3]  }
 0x415   : > { %p3325_p2 = scmp.ne.s32.totalorder %s2547_s21, %s3324_s22  ;;  %s3328_s9 = sshll.u32 %s3427_s23, 4  ;;  %s3329_s9 = int_to_ptr.vmem [resolvable:$false] %s3328_s9 }
 0x416   : > { %s3330_s10 = scalar_lea.vmem %s3329_s9, 32  ;;  %p3331_p6 = scmp.lt.s32.totalorder %s2547_s21, %s3329_s9 }
 0x417   : > { %p3326_p4 = pnand %p3325_p2, %p3517_p3  ;;  %p3332_p7 = scmp.lt.s32.totalorder %s3330_s10, %s3324_s22 }
 0x419   : > { %p3327_p5 = pneg %p3326_p4  ;;  %p3333_p8 = por %p3332_p7, %p3331_p6 }
 0x41b   : > { %p3334_p10 = pnand %p3333_p8, %p3327_p5 }
 0x41d   : > { %3337 = shalt.err (!%p3334_p10)
}
 0x41e   : > { %s3338_s28 = scalar_lea.hbm %s4875_s20, 16  ;;  %s3342_s16 = scalar_lea.hbm %s4932_s7, 32 }
 0x41f   : > { %p3339_p11 = scmp.ne.s32.totalorder %s4875_s20, %s3338_s28  ;;  %p3343_p0 = scmp.lt.u32.totalorder %s4875_s20, %s4932_s7 }
 0x420   : > { %p3344_p1 = scmp.lt.u32.totalorder %s3342_s16, %s3338_s28  ;;  %p3346_p4 = scmp.lt.u32.totalorder %s3338_s28, %s4875_s20 }
 0x421   : > { %p3340_p12 = pnand %p3339_p11, %p3517_p3 }
 0x422   : > { %p3345_p2 = por %p3344_p1, %p3343_p0 }
 0x423   : > { %p3341_p13 = pneg %p3340_p12 }
 0x424   : > { %p3347_p5 = por %p3346_p4, %p3345_p2 }
 0x426   : > { %p3348_p6 = pnand %p3347_p5, %p3341_p13 }
 0x428   : > { %3351 = shalt.err (!%p3348_p6)
}
 0x429   : > { %3232 = dma.vmem_to_hbm [thread:$0]  (%p3517_p3), %s2547_s21, 16, %s4875_s20, %s2534_s27  }
 0x42a PF: > { %p3238_p7 = scmp.ge.s32.totalorder %s3418_s8, 2  ;;  %s2558_s11 = sand.u32 1, %s3390_s24  }
 0x42b   : > { %s2559_s22 = scalar_lea.sflag [#allocation4], %s2558_s11 }
 0x42c   : > { %p3235_p8 = pnand %p3238_p7, %p3527_p9 }
 0x42e   : > { %3385 = dma.done.wait (!%p3235_p8), %s2559_s22, 16  }
 0x42f   : > { %3387 = vsyncadd (!%p3235_p8), %s2559_s22, 4294967280  ;;  %s20_s8 = sadd.s32 1, %s3418_s8   ;;  %s4994_s13 = sld [smem:[#allocation6_spill]] }
 0x430   : > { %p17_p10 = scmp.ge.s32.totalorder %s20_s8, 6   ;;  %s4995_s20 = sld [smem:[#allocation7_spill]] }
 0x431   : > { %s4996_s24 = smov %s3394_s25  ;;  %s4997_s25 = smov %s3398_s26 }
 0x432   : > { %s4998_s26 = smov %s3535_s17  ;;  %s4999_s27 = smov %s3410_s29 }
 0x433   : > { %s5000_s28 = smov %s3414_s30  ;;  %19 = sbr.rel (!%p17_p10) target bundleno = 5 (0x5), region = 99 }
 0x435   : > { %s5001_s29 = smov %s4994_s13 }
 0x436   : > { %s5002_s30 = smov %s4995_s20 }
 0x43a   :  { %2563 = vsyncpa [#allocation4], 1 }
 0x43b   :  { %2565 = vsyncpa [#allocation4 + $0x1], 1 }

</bundles_post_ra>
